<compile_context>
chip_gen: v7x
topology: tpu7x:2x2x1
jax: 0.10.0
libtpu: 0.0.40
codegen_flags: <defaults>
</compile_context>

<pallas_src>
import jax
import jax.numpy as jnp
from jax import lax
from jax.experimental import pallas as pl
from jax.experimental.pallas import tpu as pltpu

# "Parameters" of the module (from __init__ defaults).
MEAN = (0.4914, 0.4822, 0.4465)
STD = (0.2023, 0.1994, 0.201)
CROP_SIZE = 32
PADDING = 4
FLIP_PROB = 0.5


def _make_kernel(training: bool, C: int, crop: int, cy: int, cx: int,
                 pad: int, H: int, W: int):
    """Builds the Pallas kernel body (training flag baked in at trace time)."""
    # convert_image_dtype (x/255) folded into the normalize affine as Python
    # float immediates (no SMEM scale/bias loads).
    scales = tuple(float(1.0 / (255.0 * s)) for s in STD)
    biases = tuple(float(-m / s) for m, s in zip(MEAN, STD))
    npix = crop * crop
    wrows = crop + 2 * pad          # rows the random crop can ever touch (40)
    ry0 = cy - pad                  # static start of that window (>=0, wrapper)

    def kernel(sel_ref, img_ref, out_ref):
        # sel_ref: SMEM i32[3] = (crop_offset_y, crop_offset_x, flip_bit)
        # img_ref: VMEM u8 [tb, C*H, W]      (channel+row flattened)
        # out_ref: VMEM f32[tb, C*crop*crop] (lane-dense, 1024-aligned slabs)
        tb = img_ref.shape[0]

        if training:
            oy = sel_ref[0]
            ox = sel_ref[1]
            flip = sel_ref[2]

            # ---- hoisted, channel-independent selection matrix & masks ----
            # Output column v maps (after the optional flip) to pre-flip column
            # v' = flip ? crop-1-v : v; its source column in the center-cropped
            # image is v' + ox - pad (RandomCrop zero padding when outside
            # [0, crop)).
            v_ids = lax.broadcasted_iota(jnp.int32, (1, crop), 1)
            vprime = jnp.where(flip == 1, (crop - 1) - v_ids, v_ids)
            col_src = vprime + (ox - pad)                      # (1, crop)
            col_valid = (col_src >= 0) & (col_src < crop)      # (1, crop)

            r_ids = lax.broadcasted_iota(jnp.int32, (crop, 1), 0)
            row_src = r_ids + (oy - pad)                       # (crop, 1)
            row_valid = (row_src >= 0) & (row_src < crop)      # (crop, 1)

            # 0/1 column-selection (+flip) matrix in ORIGINAL-image column
            # coordinates with column validity folded in: padded columns leave
            # the MXU as exact zeros.  0/1 in bf16 is exact.
            s_ids = lax.broadcasted_iota(jnp.int32, (W, crop), 0)
            Tw = jnp.where((s_ids == (cx + col_src)) & col_valid,
                           1.0, 0.0).astype(jnp.bfloat16)      # (W, crop)

            # fill=0 happens AFTER normalize in the module, so the bias is also
            # masked per column (padded columns stay exactly 0 post-affine).
            bias_cols = [jnp.where(col_valid, b, 0.0) for b in biases]

        # C == 3: tiny static loop; batch is handled fully vectorized.  A
        # single consolidated matmul over all channels would need a sublane
        # concat / extra VMEM copies that cost more than the two extra (fully
        # DMA-hidden) MXU drains it saves, so the per-channel form is kept.
        for c in range(C):
            if training:
                # Static u8 slice of the window (no dynamic indexing of the
                # packed u8 ref), one 32-bit hop so the dynamic row shift and
                # the (tb, crop, W)->(tb*crop, W) reshape are tile-aligned.
                win = img_ref[:, c * H + ry0:c * H + ry0 + wrows, :]
                win = win.astype(jnp.float32)                  # (tb, wrows, W)
                xc = lax.dynamic_slice_in_dim(win, oy, crop, axis=1)
                lhs = xc.reshape(tb * crop, W).astype(jnp.bfloat16)  # exact 0..255
                z = jnp.dot(lhs, Tw, preferred_element_type=jnp.float32)
                z = z.reshape(tb, crop, crop)
                y = z * scales[c] + bias_cols[c]   # u8->f32 rescale + normalize
                y = jnp.where(row_valid, y, 0.0)   # zero-fill padded rows
            else:
                # Static center crop at the ref level (rows AND columns), then
                # the affine on the 32x32 tile only.
                xc = img_ref[:, c * H + cy:c * H + cy + crop, cx:cx + crop]
                y = xc.astype(jnp.float32) * scales[c] + biases[c]

            # Lane-dense store: channel slab c lives in lanes
            # [c*1024, (c+1)*1024) -> unmasked full-vreg stores.
            out_ref[:, c * npix:(c + 1) * npix] = (
                y.reshape(tb, npix).astype(out_ref.dtype))

    return kernel


def _pick_batch_tile(B: int, batch_tile: int) -> int:
    """>=2 grid steps (>=4 for larger B) for v7x's 2 TCs + DMA pipelining.

    The tile is a multiple of 8 (output-block sublane constraint) unless it
    equals the full batch.
    """
    if B <= 8:
        return B
    target_steps = 4 if B >= 32 else 2
    tb = max(8, (B // target_steps) // 8 * 8)
    return int(min(batch_tile, tb))


def image_classification_transform(img_u8, *, training: bool,
                                   crop_size: int = CROP_SIZE,
                                   padding: int = PADDING,
                                   flip_prob: float = FLIP_PROB,
                                   rng_key=None,
                                   batch_tile: int = 128,
                                   out_dtype=jnp.float32):
    """JAX wrapper reproducing _ImageClassificationBase.forward on uint8 NCHW."""
    B, C, H, W = img_u8.shape
    assert C == len(MEAN)
    assert H >= crop_size and W >= crop_size
    # torchvision center_crop top-left: int(round((H - crop) / 2)).
    cy = int(round((H - crop_size) / 2.0))
    cx = int(round((W - crop_size) / 2.0))

    if training:
        assert rng_key is not None
        k1, k2, k3 = jax.random.split(rng_key, 3)
        oy = jax.random.randint(k1, (), 0, 2 * padding + 1)   # [0, 2*pad]
        ox = jax.random.randint(k2, (), 0, 2 * padding + 1)
        flip = (jax.random.uniform(k3, ()) < flip_prob).astype(jnp.int32)
        sel = jnp.stack([oy, ox, flip]).astype(jnp.int32)
        # The static row window [cy-pad, cy+pad+crop) read by the kernel must
        # stay inside the image.  When it cannot (e.g. raw 32x32 CIFAR with
        # RandomCrop(32, padding=4)), zero-pad rows here; the padded values are
        # irrelevant because the row/column validity masks already implement
        # fill=0 in normalized space (exactly the module's op order).
        if cy < padding or cy + padding + crop_size > H:
            img_u8 = jnp.pad(img_u8,
                             ((0, 0), (0, 0), (padding, padding), (0, 0)))
            H = H + 2 * padding
            cy = cy + padding
    else:
        sel = jnp.zeros((3,), jnp.int32)

    # Flatten channel+row into one sublane axis: each image is a single
    # contiguous C*H*W-byte HBM span for the DMA engine and the block sublane
    # dim (C*H) pads far less than per-channel (H, W) tiles would.
    img_flat = img_u8.reshape(B, C * H, W)

    tb = _pick_batch_tile(B, batch_tile)
    nb = pl.cdiv(B, tb)
    npix = crop_size * crop_size
    kernel = _make_kernel(training, C, crop_size, cy, cx, padding, H, W)

    out = pl.pallas_call(
        kernel,
        out_shape=jax.ShapeDtypeStruct((B, C * npix), out_dtype),
        grid_spec=pltpu.PrefetchScalarGridSpec(
            num_scalar_prefetch=1,           # sel -> SMEM
            grid=(nb,),                      # batch-tile grid (pipelined)
            in_specs=[pl.BlockSpec((tb, C * H, W),
                                   lambda i, sel_ref: (i, 0, 0))],
            out_specs=pl.BlockSpec((tb, C * npix),
                                   lambda i, sel_ref: (i, 0)),
        ),
        compiler_params=pltpu.CompilerParams(
            dimension_semantics=("parallel",),
            vmem_limit_bytes=48 * 1024 * 1024),
    )(sel, img_flat)
    # Free trailing-dim split back to the module's NCHW output layout.
    return out.reshape(B, C, crop_size, crop_size)


def _reference(img_u8, *, training: bool, rng_key=None,
               crop_size: int = CROP_SIZE, padding: int = PADDING,
               flip_prob: float = FLIP_PROB):
    """Pure-JAX reference of the module's forward (for self-check)."""
    B, C, H, W = img_u8.shape
    cy = int(round((H - crop_size) / 2.0))
    cx = int(round((W - crop_size) / 2.0))
    x = img_u8.astype(jnp.float32)[:, :, cy:cy + crop_size,
                                   cx:cx + crop_size] / 255.0
    mean = jnp.asarray(MEAN, jnp.float32).reshape(1, C, 1, 1)
    std = jnp.asarray(STD, jnp.float32).reshape(1, C, 1, 1)
    x = (x - mean) / std
    if training:
        k1, k2, k3 = jax.random.split(rng_key, 3)
        oy = jax.random.randint(k1, (), 0, 2 * padding + 1)
        ox = jax.random.randint(k2, (), 0, 2 * padding + 1)
        flip = (jax.random.uniform(k3, ()) < flip_prob).astype(jnp.int32)
        xp = jnp.pad(x, ((0, 0), (0, 0), (padding, padding), (padding, padding)))
        x = lax.dynamic_slice(xp, (0, 0, oy, ox), (B, C, crop_size, crop_size))
        x = jnp.where(flip == 1, x[..., ::-1], x)
    return x


if __name__ == "__main__":
    key = jax.random.PRNGKey(0)
    k_img, k_aug = jax.random.split(key)

    # Small CIFAR-like batch: (B=16, C=3, H=W=36) uint8, center-cropped to 32.
    # H=W=36 exercises the center crop, the out-of-range column handling, and
    # the wrapper's row-padding path for the random crop.
    B, C, H, W = 16, 3, 36, 36
    img = jax.random.randint(k_img, (B, C, H, W), 0, 256,
                             dtype=jnp.int32).astype(jnp.uint8)

    # Eval-mode forward (deterministic path).
    out_eval = jax.block_until_ready(
        image_classification_transform(img, training=False))
    # Training-mode forward (random crop + horizontal flip, deterministic key).
    out_train = jax.block_until_ready(
        image_classification_transform(img, training=True, rng_key=k_aug))

    assert out_eval.shape == (B, C, 32, 32) and out_eval.dtype == jnp.float32
    assert out_train.shape == (B, C, 32, 32) and out_train.dtype == jnp.float32

    # Numerical self-check against the pure-JAX reference.
    ref_eval = _reference(img, training=False)
    ref_train = _reference(img, training=True, rng_key=k_aug)
    assert jnp.allclose(out_eval, ref_eval, atol=1e-4, rtol=1e-4)
    assert jnp.allclose(out_train, ref_train, atol=1e-4, rtol=1e-4)

    print("KERNEL_OK")
</pallas_src>

<mosaic_0001>
module attributes {stable_mosaic.version = 11 : i64} {
  func.func @kernel(%arg0: i32, %arg1: memref<3xi32, #tpu.memory_space<smem>>, %arg2: memref<8x108x36xi8, #tpu.memory_space<vmem>>, %arg3: memref<8x3072xf32, #tpu.memory_space<vmem>>) attributes {dimension_semantics = [#tpu.dimension_semantics<parallel>], iteration_bounds = array<i64: 2>, scalar_prefetch = 1 : i64, scratch_operands = 0 : i64, tpu.core_type = #tpu.core_type<tc>, window_params = [{transform_indices = @transform_0, window_bounds = array<i64: 8, 108, 36>}, {transform_indices = @transform_1, window_bounds = array<i64: 8, 3072>}]} {
    %c0 = arith.constant 0 : index
    %c2 = arith.constant 2 : index
    %c2_0 = arith.constant 2 : index
    %0 = vector.load %arg2[%c0, %c2, %c2_0] : memref<8x108x36xi8, #tpu.memory_space<vmem>>, vector<8x32x32xi8>
    %1 = arith.uitofp %0 : vector<8x32x32xi8> to vector<8x32x32xf32>
    %cst = arith.constant 0.0193849169 : f32
    %2 = vector.broadcast %cst : f32 to vector<8x32x32xf32>
    %3 = arith.mulf %1, %2 : vector<8x32x32xf32>
    %cst_1 = arith.constant -2.4290657 : f32
    %4 = vector.broadcast %cst_1 : f32 to vector<8x32x32xf32>
    %5 = arith.addf %3, %4 : vector<8x32x32xf32>
    %6 = vector.shape_cast %5 : vector<8x32x32xf32> to vector<8x1024xf32>
    %c0_2 = arith.constant 0 : index
    %c0_3 = arith.constant 0 : index
    %7 = vector.load %arg3[%c0_2, %c0_3] : memref<8x3072xf32, #tpu.memory_space<vmem>>, vector<8x1024xf32>
    tpu.vector_store %arg3[%c0_2, %c0_3], %6 {strides = array<i32>} : memref<8x3072xf32, #tpu.memory_space<vmem>>, vector<8x1024xf32>,
    %c0_4 = arith.constant 0 : index
    %c38 = arith.constant 38 : index
    %c2_5 = arith.constant 2 : index
    %8 = vector.load %arg2[%c0_4, %c38, %c2_5] : memref<8x108x36xi8, #tpu.memory_space<vmem>>, vector<8x32x32xi8>
    %9 = arith.uitofp %8 : vector<8x32x32xi8> to vector<8x32x32xf32>
    %cst_6 = arith.constant 0.0196668431 : f32
    %10 = vector.broadcast %cst_6 : f32 to vector<8x32x32xf32>
    %11 = arith.mulf %9, %10 : vector<8x32x32xf32>
    %cst_7 = arith.constant -2.41825485 : f32
    %12 = vector.broadcast %cst_7 : f32 to vector<8x32x32xf32>
    %13 = arith.addf %11, %12 : vector<8x32x32xf32>
    %14 = vector.shape_cast %13 : vector<8x32x32xf32> to vector<8x1024xf32>
    %c0_8 = arith.constant 0 : index
    %c1024 = arith.constant 1024 : index
    %15 = vector.load %arg3[%c0_8, %c1024] : memref<8x3072xf32, #tpu.memory_space<vmem>>, vector<8x1024xf32>
    tpu.vector_store %arg3[%c0_8, %c1024], %14 {strides = array<i32>} : memref<8x3072xf32, #tpu.memory_space<vmem>>, vector<8x1024xf32>,
    %c0_9 = arith.constant 0 : index
    %c74 = arith.constant 74 : index
    %c2_10 = arith.constant 2 : index
    %16 = vector.load %arg2[%c0_9, %c74, %c2_10] : memref<8x108x36xi8, #tpu.memory_space<vmem>>, vector<8x32x32xi8>
    %17 = arith.uitofp %16 : vector<8x32x32xi8> to vector<8x32x32xf32>
    %cst_11 = arith.constant 0.0195102915 : f32
    %18 = vector.broadcast %cst_11 : f32 to vector<8x32x32xf32>
    %19 = arith.mulf %17, %18 : vector<8x32x32xf32>
    %cst_12 = arith.constant -2.22139311 : f32
    %20 = vector.broadcast %cst_12 : f32 to vector<8x32x32xf32>
    %21 = arith.addf %19, %20 : vector<8x32x32xf32>
    %22 = vector.shape_cast %21 : vector<8x32x32xf32> to vector<8x1024xf32>
    %c0_13 = arith.constant 0 : index
    %c2048 = arith.constant 2048 : index
    %23 = vector.load %arg3[%c0_13, %c2048] : memref<8x3072xf32, #tpu.memory_space<vmem>>, vector<8x1024xf32>
    tpu.vector_store %arg3[%c0_13, %c2048], %22 {strides = array<i32>} : memref<8x3072xf32, #tpu.memory_space<vmem>>, vector<8x1024xf32>,
    return
  }
  func.func @transform_0(%arg0: i32, %arg1: memref<3xi32, #tpu.memory_space<smem>>) -> (i32, i32, i32) {
    %c0_i32 = arith.constant 0 : i32
    %c0_i32_0 = arith.constant 0 : i32
    %c0_i32_1 = arith.constant 0 : i32
    return %arg0, %c0_i32, %c0_i32_0 : i32, i32, i32
  }
  func.func @transform_1(%arg0: i32, %arg1: memref<3xi32, #tpu.memory_space<smem>>) -> (i32, i32) {
    %c0_i32 = arith.constant 0 : i32
    %c0_i32_0 = arith.constant 0 : i32
    return %arg0, %c0_i32 : i32, i32
  }
}

</mosaic_0001>

<bundles_post_ra>
// kernel: tpu_custom_call.1
= control target key start
LH: loop header
LB: loop body
LE: loop exit
PB: predicated region body
PF: predicated region fallthrough
CT: control target
= control target key end

     0   :  { %s5549_s0 = inlined_call_operand.vmem [shape: s32[3], index: 0, kind: input, shape index: {}]   ;;  %s5550_s1 = inlined_call_operand.vmem [shape: u8[16,108,36], index: 1, kind: input, shape index: {}]   ;;  %s5551_s2 = inlined_call_operand.hbm [shape: f32[16,3072], index: 2, kind: output, shape index: {}]  }
   0x1   :  { %s7_s11 = sshll.u32 %s5549_s0, 4  ;;  %s8_s11 = int_to_ptr.vmem [resolvable:$true] %s7_s11 }
   0x2   :  { %s3783_s12 = scalar_lea.vmem %s8_s11, 16  ;;  %p3788_p1 = scmp.lt.s32.totalorder %s8_s11, %s8_s11 }
   0x3   :  { %p3784_p0 = scmp.ne.s32.totalorder %s8_s11, %s3783_s12  ;;  %p3789_p2 = scmp.lt.s32.totalorder %s3783_s12, %s3783_s12 }
   0x5   :  { %p3790_p3 = por %p3789_p2, %p3788_p1 }
   0x7   :  { %p3791_p4 = pnand %p3790_p3, %p3784_p0 }
   0x9   :  { %3794 = shalt.err (!%p3791_p4)  }
   0xa   :  { %s3861_s13 = smov [#allocation3]  }
   0xb   :  { %10 = dma.vmem_to_smem %s8_s11, 16, %s3861_s13, [#allocation2] }
   0xc   :  { %3839 = dma.done.wait [#allocation2], 16 }
   0xd   :  { %3840 = vsyncadd [#allocation2], 4294967280 }
   0xe   :  { %12 = sfence }
   0xf   :  { %13 = vsyncpa [#allocation5], 0 }
  0x10   :  { %15 = vsyncpa [#allocation5 + $0x1], 0  ;;  %s3887_s14 = smov 0   ;;  %s3889_s15 = smov 0  }
  0x11   :  { %s3891_s0 = smov 0   ;;  %s3893_s16 = smov 0  }
  0x12 LB: > { %s3908_s17 = sadd.s32 4294967295, %s3859_s16   ;;  %s3566_s18 = sadd.s32 4294967294, %s3859_s16   ;;  %s3859_s16 = sphi %s3893_s16, %s5590_s16   ;;  %s3855_s0 = sphi %s3891_s0, %s5589_s0   ;;  %s3851_s15 = sphi %s3889_s15, %s5588_s15   ;;  %s3847_s14 = sphi %s3887_s14, %s5587_s14  }
  0x13   : > { %s3912_s19 = sadd.s32 1, %s3859_s16   ;;  %s54_s20 = sadd.s32 1, %s3855_s0 }
  0x14   : > { %s51_s21 = ssub.s32 %s3859_s16, %s3912_s19  ;;  %p64_p5 = scmp.ne.s32.totalorder %s3855_s0, %s3851_s15 }
  0x15   : > { %p52_p6 = scmp.eq.s32.totalorder %s51_s21, 0  ;;  %p65_p7 = scmp.eq.s32.totalorder %s3908_s17, 1 }
  0x16   : > { %p70_p8 = scmp.ne.s32.totalorder %s3851_s15, %s3847_s14  ;;  %p71_p9 = scmp.eq.s32.totalorder %s3566_s18, 1 }
  0x17   : > { %s3923_s22 = scalar_select %p52_p6, %s3855_s0, %s54_s20  }
  0x18   : > { %p3925_p10 = por %p65_p7, %p64_p5  ;;  %p3929_p11 = por %p71_p9, %p70_p8 }
  0x19   : > { %p3569_p12 = scmp.ge.s32.totalorder %s3859_s16, 1  ;;  %p99_p13 = scmp.lt.s32.totalorder %s3859_s16, 3 }
  0x1b   : > { %p100_p0 = pnand %p3569_p12, %p99_p13 }
  0x1d   : > { %103 = sbr.rel (%p100_p0) target bundleno = 828 (0x33c), region = 24 }
  0x24   : > { %s3570_s25 = sshll.u32 %s3908_s17, 3  ;;  %vm407_vm0 = vcmask 1045504   ;;  %s3862_s30 = smov 126   ;;  %vm1531_vm1 = vcmask 1041408   ;;  %vm1216_vm2 = vcmask 261120   ;;  %vm1218_vm3 = vcmask 523264  }
  0x25   : > { %p121_p1 = scmp.lt.s32.totalorder %s3570_s25, 15  ;;  %s3865_s3 = smov 64   ;;  %vm1220_vm4 = vcmask 785408  }
  0x26   : > { %s3866_s4 = smov 32   ;;  %s3867_s5 = smov 96  }
  0x27   : > { %s5592_s25 = smov (!%p121_p1, %s3570_s25), 15  ;;  %s117_s6 = sand.u32 1, %s3851_s15  }
  0x28   : > { %s3735_s26 = smul.u32 28, %s5592_s25  ;;  %s3868_s20 = smov [#allocation4]  }
  0x29   : > { %s3734_s7 = smul.u32 192, %s117_s6  ;;  %s3799_s21 = sshll.u32 %s3868_s20, 4  ;;  %s3800_s21 = int_to_ptr.vmem [resolvable:$false] %s3799_s21 }
  0x2a   : > { %s3939_s29 = scalar_lea.vmem %s5550_s1, %s3735_s26  ;;  %s3736_s9 = smul.u32 3072, %s3908_s17 }
  0x2b   : > { %v3703_v0 = vld [vmem:[%s3939_s29] sm:$0xff]   ;;  %v131_v1 = vld [vmem:[%s3939_s29 + $0x8] sm:$0x1]  ;;  %v3706_v28 = vld [vmem:[%s3939_s29 + $0x38] sm:$0xff]   ;;  %s4564_s8 = scalar_lea.vmem [#allocation4], %s3734_s7  ;;  %s3493_s17 = scalar_lea.sflag [#allocation5], %s117_s6 }
  0x2c   : > { %v3704_v2 = vld [vmem:[%s3939_s29 + $0x1c] sm:$0xff]   ;;  %v3581_v3 = vunpack.c.2.s8 %v3703_v0  ;;  %v3582_v4 = vunpack.c.3.s8 %v3703_v0  ;;  %v3577_v5 = vunpack.c.0.s8 %v3703_v0  ;;  %v3578_v6 = vunpack.c.1.s8 %v3703_v0  ;;  %v136_v23 = vld [vmem:[%s3939_s29 + $0x24] sm:$0x1]  ;;  %s3507_s10 = sshll.u32 %s4564_s8, 4  ;;  %s5503_s13 = scalar_lea.hbm %s5551_s2, %s3736_s9  ;;  %s5505_s10 = int_to_ptr.vmem [resolvable:$true] %s3507_s10 }
  0x2d   : > { %v171_v7 = vunpack.c.0.s8 %v131_v1  ;;  %v3586_v8 = vunpack.c.1.s8 %v3704_v2  ;;  %v3589_v9 = vunpack.c.2.s8 %v3704_v2  ;;  %v3585_v10 = vunpack.c.0.s8 %v3704_v2  ;;  %v141_v1 = vld [vmem:[%s3939_s29 + $0x40] sm:$0x1]  ;;  %s3795_s18 = scalar_lea.vmem %s5505_s10, 3072  ;;  %s3801_s25 = scalar_lea.vmem %s3800_s21, 6144 }
  0x2e   : > { %v209_v11 = vand.u32 255, %v3581_v3  ;;  %v210_v12 = vand.u32 255, %v3582_v4  ;;  %v207_v13 = vand.u32 255, %v3577_v5  ;;  %v208_v14 = vand.u32 255, %v3578_v6  ;;  %p3796_p2 = scmp.ne.s32.totalorder %s5505_s10, %s3795_s18  ;;  %p3802_p5 = scmp.lt.s32.totalorder %s5505_s10, %s3800_s21 }
  0x2f   : > { %v211_v15 = vand.u32 255, %v171_v7  ;;  %v213_v16 = vand.u32 255, %v3586_v8  ;;  %v214_v17 = vand.u32 255, %v3589_v9  ;;  %v212_v18 = vand.u32 255, %v3585_v10  ;;  %p3803_p6 = scmp.lt.s32.totalorder %s3801_s25, %s3795_s18 }
  0x30   : > { %v249_v19 = vcvt.s32.f32 %v209_v11  ;;  %v250_v20 = vcvt.s32.f32 %v210_v12  ;;  %v247_v21 = vcvt.s32.f32 %v207_v13  ;;  %v248_v22 = vcvt.s32.f32 %v208_v14  ;;  %v3708_v14 = vld [vmem:[%s3939_s29 + $0x54] sm:$0xff]   ;;  %p3797_p3 = pnand %p3796_p2, %p3925_p10 }
  0x31   : > { %v251_v24 = vcvt.s32.f32 %v211_v15  ;;  %v253_v25 = vcvt.s32.f32 %v213_v16  ;;  %v254_v26 = vcvt.s32.f32 %v214_v17  ;;  %v252_v27 = vcvt.s32.f32 %v212_v18  ;;  %p3804_p7 = por %p3803_p6, %p3802_p5 }
  0x32   : > { %v289_v29 = vmul.f32 0.019384917, %v249_v19  ;;  %v290_v30 = vmul.f32 0.019384917, %v250_v20  ;;  %v287_v31 = vmul.f32 0.019384917, %v247_v21  ;;  %v3590_v32 = vunpack.c.3.s8 %v3704_v2  ;;  %p3798_p4 = pneg %p3797_p3 }
  0x33   : > { %v288_v33 = vmul.f32 0.019384917, %v248_v22  ;;  %v291_v34 = vmul.f32 0.019384917, %v251_v24  ;;  %v293_v35 = vmul.f32 0.019384917, %v253_v25  ;;  %v176_v36 = vunpack.c.0.s8 %v136_v23 }
  0x34   : > { %v329_v37 = vadd.f32 -2.4290657, %v289_v29  ;;  %v330_v38 = vadd.f32 -2.4290657, %v290_v30  ;;  %v327_v39 = vadd.f32 -2.4290657, %v287_v31  ;;  %v3594_v40 = vunpack.c.1.s8 %v3706_v28  ;;  %p3805_p8 = pnand %p3804_p7, %p3798_p4 }
  0x35   : > { %v328_v41 = vadd.f32 -2.4290657, %v288_v33  ;;  %v331_v42 = vadd.f32 -2.4290657, %v291_v34  ;;  %v294_v43 = vmul.f32 0.019384917, %v254_v26  ;;  %v3597_v44 = vunpack.c.2.s8 %v3706_v28 }
  0x36   : > { %v411_v45 = vrot.slane %v329_v37, 2  ;;  %v413_v46 = vrot.slane %v330_v38, 2  ;;  %v408_v47 = vrot.slane %v327_v39, 2  ;;  %v333_v48 = vadd.f32 -2.4290657, %v293_v35 }
  0x37   : > { %v409_v49 = vrot.slane %v328_v41, 2  ;;  %v415_v50 = vrot.slane %v331_v42, 2  ;;  %v334_v51 = vadd.f32 -2.4290657, %v294_v43  ;;  %v292_v52 = vmul.f32 0.019384917, %v252_v27 }
  0x38   : > { %v414_v53 = vsel %vm407_vm0, %v411_v45, %v413_v46  ;;  %v418_v54 = vrot.slane %v333_v48, 2  ;;  %v215_v55 = vand.u32 255, %v3590_v32  ;;  %v216_v56 = vand.u32 255, %v176_v36  ;;  %v146_v35 = vld [vmem:[%s3939_s29 + $0x5c] sm:$0x1] }
  0x39   : > { %484 = vrot.lane.b32.xlu1 %v414_v53, %s3862_s30  ;;  %v410_v57 = vsel %vm407_vm0, %v408_v47, %v409_v49  ;;  %v416_v58 = vsel %vm407_vm0, %v413_v46, %v415_v50  ;;  %v412_v59 = vsel %vm407_vm0, %v409_v49, %v411_v45  ;;  %v420_v60 = vrot.slane %v334_v51, 2 }
  0x3a   : > { %480 = vrot.lane.b32.xlu0 %v410_v57, %s3862_s30  ;;  %v332_v61 = vadd.f32 -2.4290657, %v292_v52  ;;  %v255_v62 = vcvt.s32.f32 %v215_v55  ;;  %v256_v63 = vcvt.s32.f32 %v216_v56  ;;  %v218_v0 = vand.u32 255, %v3594_v40  ;;  %v3710_v52 = vld [vmem:[%s3939_s29 + $0x70] sm:$0xff]  }
  0x3b   : > { %v421_v2 = vsel %vm407_vm0, %v418_v54, %v420_v60  ;;  %v219_v3 = vand.u32 255, %v3597_v44  ;;  %v3593_v4 = vunpack.c.0.s8 %v3706_v28  ;;  %v3598_v5 = vunpack.c.3.s8 %v3706_v28 }
  0x3c   : > { %v417_v6 = vrot.slane %v332_v61, 2  ;;  %v295_v7 = vmul.f32 0.019384917, %v255_v62  ;;  %v296_v8 = vmul.f32 0.019384917, %v256_v63  ;;  %v258_v9 = vcvt.s32.f32 %v218_v0 }
  0x3d   : > { %486 = vrot.lane.b32.xlu1 %v416_v58, %s3862_s30  ;;  %v259_v10 = vcvt.s32.f32 %v219_v3  ;;  %v217_v11 = vand.u32 255, %v3593_v4  ;;  %v181_v12 = vunpack.c.0.s8 %v141_v1  ;;  %v220_v13 = vand.u32 255, %v3598_v5 }
  0x3e   : > { %482 = vrot.lane.b32.xlu0 %v412_v59, %s3862_s30  ;;  %v419_v15 = vsel %vm407_vm0, %v417_v6, %v418_v54  ;;  %v335_v16 = vadd.f32 -2.4290657, %v295_v7  ;;  %v336_v17 = vadd.f32 -2.4290657, %v296_v8  ;;  %v298_v18 = vmul.f32 0.019384917, %v258_v9 }
  0x3f   : > { %v299_v19 = vmul.f32 0.019384917, %v259_v10  ;;  %v257_v20 = vcvt.s32.f32 %v217_v11  ;;  %v221_v21 = vand.u32 255, %v181_v12  ;;  %v260_v22 = vcvt.s32.f32 %v220_v13  ;;  %v151_v9 = vld [vmem:[%s3939_s29 + $0x78] sm:$0x1] }
  0x40   : > { %v422_v23 = vrot.slane %v335_v16, 2  ;;  %v424_v24 = vrot.slane %v336_v17, 2  ;;  %v338_v25 = vadd.f32 -2.4290657, %v298_v18  ;;  %v3602_v26 = vunpack.c.1.s8 %v3708_v14 }
  0x41   : > { %490 = vrot.lane.b32.xlu1 %v421_v2, %s3862_s30  ;;  %v339_v27 = vadd.f32 -2.4290657, %v299_v19  ;;  %v297_v28 = vmul.f32 0.019384917, %v257_v20  ;;  %v261_v29 = vcvt.s32.f32 %v221_v21  ;;  %v300_v30 = vmul.f32 0.019384917, %v260_v22 }
  0x42   : > { %488 = vrot.lane.b32.xlu0 %v419_v15, %s3862_s30  ;;  %v425_v31 = vsel %vm407_vm0, %v422_v23, %v424_v24  ;;  %v423_v32 = vsel %vm407_vm0, %v420_v60, %v422_v23  ;;  %v427_v33 = vrot.slane %v338_v25, 2  ;;  %v3605_v34 = vunpack.c.2.s8 %v3708_v14 }
  0x43   : > { %v429_v36 = vrot.slane %v339_v27, 2  ;;  %v337_v37 = vadd.f32 -2.4290657, %v297_v28  ;;  %v301_v38 = vmul.f32 0.019384917, %v261_v29  ;;  %v223_v39 = vand.u32 255, %v3602_v26 }
  0x44   : > { %v340_v40 = vadd.f32 -2.4290657, %v300_v30  ;;  %v224_v41 = vand.u32 255, %v3605_v34  ;;  %v3601_v42 = vunpack.c.0.s8 %v3708_v14  ;;  %v3606_v43 = vunpack.c.3.s8 %v3708_v14  ;;  %v3712_v26 = vld [vmem:[%s3939_s29 + $0x8c] sm:$0xff]  }
  0x45   : > { %494 = vrot.lane.b32.xlu1 %v425_v31, %s3862_s30  ;;  %v430_v44 = vsel %vm407_vm0, %v427_v33, %v429_v36  ;;  %v426_v45 = vrot.slane %v337_v37, 2  ;;  %v341_v46 = vadd.f32 -2.4290657, %v301_v38  ;;  %v263_v47 = vcvt.s32.f32 %v223_v39 }
  0x46   : > { %492 = vrot.lane.b32.xlu0 %v423_v32, %s3862_s30  ;;  %v431_v48 = vrot.slane %v340_v40, 2  ;;  %v264_v49 = vcvt.s32.f32 %v224_v41  ;;  %v222_v50 = vand.u32 255, %v3601_v42  ;;  %v186_v51 = vunpack.c.0.s8 %v146_v35 }
  0x47   : > { %v428_v53 = vsel %vm407_vm0, %v426_v45, %v427_v33  ;;  %v433_v54 = vrot.slane %v341_v46, 2  ;;  %v303_v55 = vmul.f32 0.019384917, %v263_v47  ;;  %v225_v56 = vand.u32 255, %v3606_v43  ;;  %v156_v47 = vld [vmem:[%s3939_s29 + $0x94] sm:$0x1] }
  0x48   : > { %v432_v57 = vsel %vm407_vm0, %v429_v36, %v431_v48  ;;  %v304_v58 = vmul.f32 0.019384917, %v264_v49  ;;  %v262_v59 = vcvt.s32.f32 %v222_v50  ;;  %v226_v60 = vand.u32 255, %v186_v51 }
  0x49   : > { %498 = vrot.lane.b32.xlu1 %v430_v44, %s3862_s30  ;;  %v434_v61 = vsel %vm407_vm0, %v431_v48, %v433_v54  ;;  %v343_v62 = vadd.f32 -2.4290657, %v303_v55  ;;  %v265_v63 = vcvt.s32.f32 %v225_v56  ;;  %v3610_v0 = vunpack.c.1.s8 %v3710_v52  ;;  %v3714_v56 = vld [vmem:[%s3939_s29 + $0xa8] sm:$0xff]  }
  0x4a   : > { %496 = vrot.lane.b32.xlu0 %v428_v53, %s3862_s30  ;;  %v344_v1 = vadd.f32 -2.4290657, %v304_v58  ;;  %v302_v2 = vmul.f32 0.019384917, %v262_v59  ;;  %v266_v3 = vcvt.s32.f32 %v226_v60  ;;  %v3613_v4 = vunpack.c.2.s8 %v3710_v52 }
  0x4b   : > { %v436_v5 = vrot.slane %v343_v62, 2  ;;  %v305_v6 = vmul.f32 0.019384917, %v265_v63  ;;  %v228_v7 = vand.u32 255, %v3610_v0  ;;  %v3609_v8 = vunpack.c.0.s8 %v3710_v52 }
  0x4c   : > { %v438_v10 = vrot.slane %v344_v1, 2  ;;  %v342_v11 = vadd.f32 -2.4290657, %v302_v2  ;;  %v306_v12 = vmul.f32 0.019384917, %v266_v3  ;;  %v229_v13 = vand.u32 255, %v3613_v4 }
  0x4d   : > { %502 = vrot.lane.b32.xlu1 %v434_v61, %s3862_s30  ;;  %v345_v14 = vadd.f32 -2.4290657, %v305_v6  ;;  %v268_v15 = vcvt.s32.f32 %v228_v7  ;;  %v227_v16 = vand.u32 255, %v3609_v8  ;;  %v3614_v17 = vunpack.c.3.s8 %v3710_v52 }
  0x4e   : > { %500 = vrot.lane.b32.xlu0 %v432_v57, %s3862_s30  ;;  %v439_v18 = vsel %vm407_vm0, %v436_v5, %v438_v10  ;;  %v435_v19 = vrot.slane %v342_v11, 2  ;;  %v346_v20 = vadd.f32 -2.4290657, %v306_v12  ;;  %v269_v21 = vcvt.s32.f32 %v229_v13 }
  0x4f   : > { %v440_v22 = vrot.slane %v345_v14, 2  ;;  %v308_v23 = vmul.f32 0.019384917, %v268_v15  ;;  %v267_v24 = vcvt.s32.f32 %v227_v16  ;;  %v191_v25 = vunpack.c.0.s8 %v151_v9 }
  0x50   : > { %v437_v27 = vsel %vm407_vm0, %v435_v19, %v436_v5  ;;  %v442_v28 = vrot.slane %v346_v20, 2  ;;  %v309_v29 = vmul.f32 0.019384917, %v269_v21  ;;  %v230_v30 = vand.u32 255, %v3614_v17  ;;  %v161_v21 = vld [vmem:[%s3939_s29 + $0xb0] sm:$0x1] }
  0x51   : > { %506 = vrot.lane.b32.xlu1 %v439_v18, %s3862_s30  ;;  %v441_v31 = vsel %vm407_vm0, %v438_v10, %v440_v22  ;;  %v348_v32 = vadd.f32 -2.4290657, %v308_v23  ;;  %v307_v33 = vmul.f32 0.019384917, %v267_v24  ;;  %v231_v34 = vand.u32 255, %v191_v25 }
  0x52   : > { %504 = vrot.lane.b32.xlu0 %v437_v27, %s3862_s30  ;;  %v443_v35 = vsel %vm407_vm0, %v440_v22, %v442_v28  ;;  %v349_v36 = vadd.f32 -2.4290657, %v309_v29  ;;  %v270_v37 = vcvt.s32.f32 %v230_v30  ;;  %v3618_v38 = vunpack.c.1.s8 %v3712_v26  ;;  %v3716_v30 = vld [vmem:[%s3939_s29 + $0xc4] sm:$0xff]  }
  0x53   : > { %v445_v39 = vrot.slane %v348_v32, 2  ;;  %v347_v40 = vadd.f32 -2.4290657, %v307_v33  ;;  %v271_v41 = vcvt.s32.f32 %v231_v34  ;;  %v3621_v42 = vunpack.c.2.s8 %v3712_v26 }
  0x54   : > { %v447_v43 = vrot.slane %v349_v36, 2  ;;  %v310_v44 = vmul.f32 0.019384917, %v270_v37  ;;  %v233_v45 = vand.u32 255, %v3618_v38  ;;  %v3617_v46 = vunpack.c.0.s8 %v3712_v26 }
  0x55   : > { %510 = vrot.lane.b32.xlu1 %v443_v35, %s3862_s30  ;;  %v444_v48 = vrot.slane %v347_v40, 2  ;;  %v311_v49 = vmul.f32 0.019384917, %v271_v41  ;;  %v234_v50 = vand.u32 255, %v3621_v42  ;;  %v3622_v51 = vunpack.c.3.s8 %v3712_v26 }
  0x56   : > { %508 = vrot.lane.b32.xlu0 %v441_v31, %s3862_s30  ;;  %v448_v52 = vsel %vm407_vm0, %v445_v39, %v447_v43  ;;  %v350_v53 = vadd.f32 -2.4290657, %v310_v44  ;;  %v273_v54 = vcvt.s32.f32 %v233_v45  ;;  %v232_v55 = vand.u32 255, %v3617_v46 }
  0x57   : > { %v446_v57 = vsel %vm407_vm0, %v444_v48, %v445_v39  ;;  %v351_v58 = vadd.f32 -2.4290657, %v311_v49  ;;  %v274_v59 = vcvt.s32.f32 %v234_v50  ;;  %v196_v60 = vunpack.c.0.s8 %v156_v47 }
  0x58   : > { %v449_v61 = vrot.slane %v350_v53, 2  ;;  %v313_v62 = vmul.f32 0.019384917, %v273_v54  ;;  %v272_v63 = vcvt.s32.f32 %v232_v55  ;;  %v235_v0 = vand.u32 255, %v3622_v51  ;;  %v166_v51 = vld [vmem:[%s3939_s29 + $0xcc] sm:$0x1] }
  0x59   : > { %514 = vrot.lane.b32.xlu1 %v448_v52, %s3862_s30  ;;  %v451_v1 = vrot.slane %v351_v58, 2  ;;  %v314_v2 = vmul.f32 0.019384917, %v274_v59  ;;  %v236_v3 = vand.u32 255, %v196_v60  ;;  %v3626_v4 = vunpack.c.1.s8 %v3714_v56 }
  0x5a   : > { %512 = vrot.lane.b32.xlu0 %v446_v57, %s3862_s30  ;;  %v450_v5 = vsel %vm407_vm0, %v447_v43, %v449_v61  ;;  %v353_v6 = vadd.f32 -2.4290657, %v313_v62  ;;  %v312_v7 = vmul.f32 0.019384917, %v272_v63  ;;  %v275_v8 = vcvt.s32.f32 %v235_v0 }
  0x5b   : > { %v452_v9 = vsel %vm407_vm0, %v449_v61, %v451_v1  ;;  %v354_v10 = vadd.f32 -2.4290657, %v314_v2  ;;  %v276_v11 = vcvt.s32.f32 %v236_v3  ;;  %v3629_v12 = vunpack.c.2.s8 %v3714_v56 }
  0x5c   : > { %v454_v13 = vrot.slane %v353_v6, 2  ;;  %v352_v14 = vadd.f32 -2.4290657, %v312_v7  ;;  %v315_v15 = vmul.f32 0.019384917, %v275_v8  ;;  %v238_v16 = vand.u32 255, %v3626_v4 }
  0x5d   : > { %518 = vrot.lane.b32.xlu1 %v452_v9, %s3862_s30  ;;  %v456_v17 = vrot.slane %v354_v10, 2  ;;  %v316_v18 = vmul.f32 0.019384917, %v276_v11  ;;  %v239_v19 = vand.u32 255, %v3629_v12  ;;  %v3625_v20 = vunpack.c.0.s8 %v3714_v56  ;;  %v4007_v4 = vld [vmem:[%s3939_s29 + $0xa] sm:$0xff]  }
  0x5e   : > { %516 = vrot.lane.b32.xlu0 %v450_v5, %s3862_s30  ;;  %v453_v22 = vrot.slane %v352_v14, 2  ;;  %v355_v23 = vadd.f32 -2.4290657, %v315_v15  ;;  %v278_v24 = vcvt.s32.f32 %v238_v16  ;;  %v3630_v25 = vunpack.c.3.s8 %v3714_v56  ;;  %v1251_v9 = vld [vmem:[%s3939_s29 + $0x8] sm:$0x2] }
  0x5f   : > { %v457_v26 = vsel %vm407_vm0, %v454_v13, %v456_v17  ;;  %v356_v27 = vadd.f32 -2.4290657, %v316_v18  ;;  %v279_v28 = vcvt.s32.f32 %v239_v19  ;;  %v237_v29 = vand.u32 255, %v3625_v20 }
  0x60   : > { %v455_v31 = vsel %vm407_vm0, %v453_v22, %v454_v13  ;;  %v458_v32 = vrot.slane %v355_v23, 2  ;;  %v318_v33 = vmul.f32 0.019384917, %v278_v24  ;;  %v201_v34 = vunpack.c.0.s8 %v161_v21 }
  0x61   : > { %522 = vrot.lane.b32.xlu1 %v457_v26, %s3862_s30  ;;  %v460_v35 = vrot.slane %v356_v27, 2  ;;  %v319_v36 = vmul.f32 0.019384917, %v279_v28  ;;  %v277_v37 = vcvt.s32.f32 %v237_v29  ;;  %v240_v38 = vand.u32 255, %v3630_v25 }
  0x62   : > { %520 = vrot.lane.b32.xlu0 %v455_v31, %s3862_s30  ;;  %v459_v39 = vsel %vm407_vm0, %v456_v17, %v458_v32  ;;  %v358_v40 = vadd.f32 -2.4290657, %v318_v33  ;;  %v241_v41 = vand.u32 255, %v201_v34  ;;  %v3634_v42 = vunpack.c.1.s8 %v3716_v30  ;;  %v1256_v33 = vld [vmem:[%s3939_s29 + $0x24] sm:$0x2] }
  0x63   : > { %v461_v43 = vsel %vm407_vm0, %v458_v32, %v460_v35  ;;  %v359_v44 = vadd.f32 -2.4290657, %v319_v36  ;;  %v317_v45 = vmul.f32 0.019384917, %v277_v37  ;;  %v280_v46 = vcvt.s32.f32 %v240_v38 }
  0x64   : > { %v463_v47 = vrot.slane %v358_v40, 2  ;;  %v281_v48 = vcvt.s32.f32 %v241_v41  ;;  %v3637_v49 = vunpack.c.2.s8 %v3716_v30  ;;  %v243_v50 = vand.u32 255, %v3634_v42  ;;  %v4023_v38 = vld [vmem:[%s3939_s29 + $0x26] ss:$6 sps:$2 sm:$0xf]  }
  0x65   : > { %526 = vrot.lane.b32.xlu1 %v461_v43, %s3862_s30  ;;  %v465_v52 = vrot.slane %v359_v44, 2  ;;  %v357_v53 = vadd.f32 -2.4290657, %v317_v45  ;;  %v320_v54 = vmul.f32 0.019384917, %v280_v46  ;;  %v3633_v55 = vunpack.c.0.s8 %v3716_v30 }
  0x66   : > { %524 = vrot.lane.b32.xlu0 %v459_v39, %s3862_s30  ;;  %v321_v56 = vmul.f32 0.019384917, %v281_v48  ;;  %v244_v57 = vand.u32 255, %v3637_v49  ;;  %v283_v58 = vcvt.s32.f32 %v243_v50  ;;  %v3638_v59 = vunpack.c.3.s8 %v3716_v30 }
  0x67   : > { %v466_v60 = vsel %vm407_vm0, %v463_v47, %v465_v52  ;;  %v462_v61 = vrot.slane %v357_v53, 2  ;;  %v360_v62 = vadd.f32 -2.4290657, %v320_v54  ;;  %v242_v63 = vand.u32 255, %v3633_v55  ;;  %v4032_v55 = vld [vmem:[%s3939_s29 + $0x28] ss:$56 sps:$4 sm:$0xff]  }
  0x68   : > { %v361_v0 = vadd.f32 -2.4290657, %v321_v56  ;;  %v284_v1 = vcvt.s32.f32 %v244_v57  ;;  %v323_v2 = vmul.f32 0.019384917, %v283_v58  ;;  %v206_v3 = vunpack.c.0.s8 %v166_v51 }
  0x69   : > { %530 = vrot.lane.b32.xlu1 %v466_v60, %s3862_s30  ;;  %v464_v5 = vsel %vm407_vm0, %v462_v61, %v463_v47  ;;  %v467_v6 = vrot.slane %v360_v62, 2  ;;  %v282_v7 = vcvt.s32.f32 %v242_v63  ;;  %v245_v8 = vand.u32 255, %v3638_v59 }
  0x6a   : > { %528 = vrot.lane.b32.xlu0 %v464_v5, %s3862_s30  ;;  %v469_v10 = vrot.slane %v361_v0, 2  ;;  %v324_v11 = vmul.f32 0.019384917, %v284_v1  ;;  %v363_v12 = vadd.f32 -2.4290657, %v323_v2  ;;  %v246_v13 = vand.u32 255, %v206_v3 }
  0x6b   : > { %v468_v14 = vsel %vm407_vm0, %v465_v52, %v467_v6  ;;  %v322_v15 = vmul.f32 0.019384917, %v282_v7  ;;  %v285_v16 = vcvt.s32.f32 %v245_v8  ;;  %v3641_v17 = vunpack.c.0.s8 %v4007_v4  ;;  %v4042_v8 = vld [vmem:[%s3939_s29 + $0x42] sm:$0xff]  }
  0x6c   : > { %v470_v18 = vsel %vm407_vm0, %v467_v6, %v469_v10  ;;  %v364_v19 = vadd.f32 -2.4290657, %v324_v11  ;;  %v472_v20 = vrot.slane %v363_v12, 2  ;;  %v286_v21 = vcvt.s32.f32 %v246_v13  ;;  %v1261_v13 = vld [vmem:[%s3939_s29 + $0x40] sm:$0x2] }
  0x6d   : > { %534 = vrot.lane.b32.xlu1 %v470_v18, %s3862_s30  ;;  %v362_v22 = vadd.f32 -2.4290657, %v322_v15  ;;  %v325_v23 = vmul.f32 0.019384917, %v285_v16  ;;  %v1291_v24 = vunpack.c.0.s8 %v1251_v9  ;;  %v1332_v25 = vand.u32 255, %v3641_v17 }
  0x6e   : > { %532 = vrot.lane.b32.xlu0 %v468_v14, %s3862_s30  ;;  %v474_v26 = vrot.slane %v364_v19, 2  ;;  %v326_v27 = vmul.f32 0.019384917, %v286_v21  ;;  %v3642_v28 = vunpack.c.1.s8 %v4007_v4  ;;  %v1294_v36 = vunpack.c.2.s8 %v4007_v4 }
  0x6f   : > { %v471_v29 = vrot.slane %v362_v22, 2  ;;  %v365_v30 = vadd.f32 -2.4290657, %v325_v23  ;;  %v1331_v31 = vand.u32 255, %v1291_v24  ;;  %v1372_v32 = vcvt.s32.f32 %v1332_v25 }
  0x70   : > { %v475_v34 = vsel %vm407_vm0, %v472_v20, %v474_v26  ;;  %v366_v35 = vadd.f32 -2.4290657, %v326_v27  ;;  %v1333_v37 = vand.u32 255, %v3642_v28  ;;  %v1334_v44 = vand.u32 255, %v1294_v36 }
  0x71   : > { %538 = vrot.lane.b32.xlu1 %v475_v34, %s3862_s30  ;;  %v473_v39 = vsel %vm407_vm0, %v471_v29, %v472_v20  ;;  %v476_v40 = vrot.slane %v365_v30, 2  ;;  %v1371_v41 = vcvt.s32.f32 %v1331_v31  ;;  %v1412_v42 = vmul.f32 0.019666843, %v1372_v32 }
  0x72   : > { %536 = vrot.lane.b32.xlu0 %v473_v39, %s3862_s30  ;;  %v478_v43 = vrot.slane %v366_v35, 2  ;;  %v1373_v45 = vcvt.s32.f32 %v1333_v37  ;;  %v1296_v46 = vunpack.c.0.s8 %v1256_v33  ;;  %v1297_v50 = vunpack.c.0.s8 %v4023_v38 }
  0x73   : > { %v477_v47 = vsel %vm407_vm0, %v474_v26, %v476_v40  ;;  %v1411_v48 = vmul.f32 0.019666843, %v1371_v41  ;;  %v1452_v49 = vadd.f32 -2.4182549, %v1412_v42  ;;  %v1374_v52 = vcvt.s32.f32 %v1334_v44  ;;  %v1266_v41 = vld [vmem:[%s3939_s29 + $0x5c] sm:$0x2] }
  0x74   : > { %v479_v51 = vsel %vm407_vm0, %v476_v40, %v478_v43  ;;  %v1413_v53 = vmul.f32 0.019666843, %v1373_v45  ;;  %v1336_v54 = vand.u32 255, %v1296_v46  ;;  %v1337_v58 = vand.u32 255, %v1297_v50 }
  0x75   : > { %542 = vrot.lane.b32.xlu1 %v479_v51, %s3862_s30  ;;  %v1451_v56 = vadd.f32 -2.4182549, %v1411_v48  ;;  %v1533_v57 = vrot.slane %v1452_v49, 6  ;;  %v1414_v59 = vmul.f32 0.019666843, %v1374_v52  ;;  %v3645_v0 = vunpack.c.0.s8 %v4032_v55 }
  0x76   : > { %540 = vrot.lane.b32.xlu0 %v477_v47, %s3862_s30  ;;  %v1453_v60 = vadd.f32 -2.4182549, %v1413_v53  ;;  %v1376_v61 = vcvt.s32.f32 %v1336_v54  ;;  %v1377_v63 = vcvt.s32.f32 %v1337_v58  ;;  %v3646_v7 = vunpack.c.1.s8 %v4032_v55  ;;  %v1267_v46 = vld [vmem:[%s3939_s29 + $0x5e] ss:$6 sps:$2 sm:$0xf]  }
  0x77   : > { %v1532_v62 = vrot.slane %v1451_v56, 6  ;;  %v4037_v1 = vadd.f32 -2.4182549, %v1414_v59  ;;  %v1338_v12 = vand.u32 255, %v3645_v0  ;;  %v1295_v16 = vunpack.c.3.s8 %v4007_v4 }
  0x78   : > { %v1535_v2 = vrot.slane %v1453_v60, 6  ;;  %v1416_v3 = vmul.f32 0.019666843, %v1376_v61  ;;  %v1417_v6 = vmul.f32 0.019666843, %v1377_v63  ;;  %v1339_v15 = vand.u32 255, %v3646_v7 }
  0x79   : > { %v1534_v5 = vsel %vm1531_vm1, %v1532_v62, %v1533_v57  ;;  %v1537_v9 = vrot.slane %v4037_v1, 6  ;;  %v1378_v19 = vcvt.s32.f32 %v1338_v12  ;;  %v3649_v20 = vunpack.c.0.s8 %v4042_v8 }
  0x7a   : > { %1604 = vrot.lane.b32.xlu0 %v1534_v5, %s3862_s30  ;;  %v1456_v10 = vadd.f32 -2.4182549, %v1416_v3  ;;  %v1536_v11 = vsel %vm1531_vm1, %v1533_v57, %v1535_v2  ;;  %v1457_v14 = vadd.f32 -2.4182549, %v1417_v6  ;;  %v1379_v22 = vcvt.s32.f32 %v1339_v15 }
  0x7b   : > { %1606 = vrot.lane.b32.xlu1 %v1536_v11, %s3862_s30  ;;  %v1538_v17 = vsel %vm1531_vm1, %v1535_v2, %v1537_v9  ;;  %v1335_v23 = vand.u32 255, %v1295_v16  ;;  %v1301_v24 = vunpack.c.0.s8 %v1261_v13  ;;  %v1418_v25 = vmul.f32 0.019666843, %v1378_v19 }
  0x7c   : > { %v1541_v18 = vrot.slane %v1456_v10, 6  ;;  %v1542_v21 = vrot.slane %v1457_v14, 6  ;;  %v1342_v26 = vand.u32 255, %v3649_v20  ;;  %v3650_v27 = vunpack.c.1.s8 %v4042_v8  ;;  %v4072_v14 = vld [vmem:[%s3939_s29 + $0x7a] sm:$0xff]  }
  0x7d   : > { %v1304_v28 = vunpack.c.2.s8 %v4042_v8  ;;  %v1419_v29 = vmul.f32 0.019666843, %v1379_v22  ;;  %v1375_v30 = vcvt.s32.f32 %v1335_v23  ;;  %v1341_v31 = vand.u32 255, %v1301_v24 }
  0x7e   : > { %1608 = vrot.lane.b32.xlu0 %v1538_v17, %s3862_s30  ;;  %v1543_v4 = vsel %vm1531_vm1, %v1541_v18, %v1542_v21  ;;  %v1458_v32 = vadd.f32 -2.4182549, %v1418_v25  ;;  %v1382_v33 = vcvt.s32.f32 %v1342_v26  ;;  %v1343_v34 = vand.u32 255, %v3650_v27 }
  0x7f   : > { %v1344_v35 = vand.u32 255, %v1304_v28  ;;  %v1459_v36 = vadd.f32 -2.4182549, %v1419_v29  ;;  %v1415_v37 = vmul.f32 0.019666843, %v1375_v30  ;;  %v1381_v39 = vcvt.s32.f32 %v1341_v31 }
  0x80   : > { %v1300_v40 = vunpack.c.1.s8 %v4023_v38  ;;  %v1544_v42 = vrot.slane %v1458_v32, 6  ;;  %v1422_v43 = vmul.f32 0.019666843, %v1382_v33  ;;  %v1383_v44 = vcvt.s32.f32 %v1343_v34 }
  0x81   : > { %v1384_v45 = vcvt.s32.f32 %v1344_v35  ;;  %v1546_v47 = vrot.slane %v1459_v36, 6  ;;  %v1455_v48 = vadd.f32 -2.4182549, %v1415_v37  ;;  %v1421_v49 = vmul.f32 0.019666843, %v1381_v39 }
  0x82   : > { %1612 = vrot.lane.b32.xlu0 %v1543_v4, %s3862_s30  ;;  %v1340_v50 = vand.u32 255, %v1300_v40  ;;  %v1462_v51 = vadd.f32 -2.4182549, %v1422_v43  ;;  %v1545_v52 = vsel %vm1531_vm1, %v1542_v21, %v1544_v42  ;;  %v1423_v53 = vmul.f32 0.019666843, %v1383_v44 }
  0x83   : > { %v1424_v54 = vmul.f32 0.019666843, %v1384_v45  ;;  %v1547_v56 = vsel %vm1531_vm1, %v1544_v42, %v1546_v47  ;;  %v1539_v38 = vrot.slane %v1455_v48, 6  ;;  %v1461_v57 = vadd.f32 -2.4182549, %v1421_v49 }
  0x84   : > { %v1380_v58 = vcvt.s32.f32 %v1340_v50  ;;  %v1551_v59 = vrot.slane %v1462_v51, 6  ;;  %v1463_v60 = vadd.f32 -2.4182549, %v1423_v53  ;;  %v1306_v62 = vunpack.c.0.s8 %v1266_v41  ;;  %v1271_v4 = vld [vmem:[%s3939_s29 + $0x78] sm:$0x2] }
  0x85   : > { %v4063_v61 = vadd.f32 -2.4182549, %v1424_v54  ;;  %v1540_v63 = vsel %vm1531_vm1, %v1537_v9, %v1539_v38  ;;  %v1550_v0 = vrot.slane %v1461_v57, 6  ;;  %v1307_v2 = vunpack.c.0.s8 %v1267_v46 }
  0x86   : > { %1616 = vrot.lane.b32.xlu0 %v1547_v56, %s3862_s30  ;;  %v1420_v1 = vmul.f32 0.019666843, %v1380_v58  ;;  %1610 = vrot.lane.b32.xlu1 %v1540_v63, %s3862_s30  ;;  %v1553_v3 = vrot.slane %v1463_v60, 6  ;;  %v1346_v6 = vand.u32 255, %v1306_v62  ;;  %v3653_v7 = vunpack.c.2.s8 %v4032_v55 }
  0x87   : > { %v1555_v5 = vrot.slane %v4063_v61, 6  ;;  %v1552_v10 = vsel %vm1531_vm1, %v1550_v0, %v1551_v59  ;;  %v1347_v12 = vand.u32 255, %v1307_v2  ;;  %v3654_v13 = vunpack.c.3.s8 %v4032_v55 }
  0x88   : > { %v1460_v11 = vadd.f32 -2.4182549, %v1420_v1  ;;  %v1386_v15 = vcvt.s32.f32 %v1346_v6  ;;  %v1554_v16 = vsel %vm1531_vm1, %v1551_v59, %v1553_v3  ;;  %v1348_v17 = vand.u32 255, %v3653_v7 }
  0x89   : > { %v1556_v9 = vsel %vm1531_vm1, %v1553_v3, %v1555_v5  ;;  %v1387_v19 = vcvt.s32.f32 %v1347_v12  ;;  %v1349_v20 = vand.u32 255, %v3654_v13  ;;  %v1305_v21 = vunpack.c.3.s8 %v4042_v8 }
  0x8a   : > { %1620 = vrot.lane.b32.xlu0 %v1552_v10, %s3862_s30  ;;  %v1548_v18 = vrot.slane %v1460_v11, 6  ;;  %1614 = vrot.lane.b32.xlu1 %v1545_v52, %s3862_s30  ;;  %v1426_v55 = vmul.f32 0.019666843, %v1386_v15  ;;  %v1388_v22 = vcvt.s32.f32 %v1348_v17  ;;  %v1310_v23 = vunpack.c.1.s8 %v1267_v46 }
  0x8b   : > { %v3657_v24 = vunpack.c.0.s8 %v4072_v14  ;;  %v1427_v26 = vmul.f32 0.019666843, %v1387_v19  ;;  %v1389_v27 = vcvt.s32.f32 %v1349_v20  ;;  %v1345_v28 = vand.u32 255, %v1305_v21 }
  0x8c   : > { %v1549_v25 = vsel %vm1531_vm1, %v1546_v47, %v1548_v18  ;;  %v1466_v29 = vadd.f32 -2.4182549, %v1426_v55  ;;  %v1428_v30 = vmul.f32 0.019666843, %v1388_v22  ;;  %v1350_v31 = vand.u32 255, %v1310_v23 }
  0x8d   : > { %v3658_v8 = vunpack.c.1.s8 %v4072_v14  ;;  %v1467_v32 = vadd.f32 -2.4182549, %v1427_v26  ;;  %v1429_v33 = vmul.f32 0.019666843, %v1389_v27  ;;  %v1385_v34 = vcvt.s32.f32 %v1345_v28 }
  0x8e   : > { %1624 = vrot.lane.b32.xlu0 %v1556_v9, %s3862_s30  ;;  %v1352_v35 = vand.u32 255, %v3657_v24  ;;  %1618 = vrot.lane.b32.xlu1 %v1549_v25, %s3862_s30  ;;  %v1559_v36 = vrot.slane %v1466_v29, 6  ;;  %v1468_v37 = vadd.f32 -2.4182549, %v1428_v30  ;;  %v1390_v39 = vcvt.s32.f32 %v1350_v31 }
  0x8f   : > { %v1353_v40 = vand.u32 255, %v3658_v8  ;;  %v1560_v41 = vrot.slane %v1467_v32, 6  ;;  %v1469_v42 = vadd.f32 -2.4182549, %v1429_v33  ;;  %v1425_v43 = vmul.f32 0.019666843, %v1385_v34 }
  0x90   : > { %v1392_v44 = vcvt.s32.f32 %v1352_v35  ;;  %v1562_v45 = vrot.slane %v1468_v37, 6  ;;  %v1430_v46 = vmul.f32 0.019666843, %v1390_v39  ;;  %v1311_v48 = vunpack.c.0.s8 %v1271_v4 }
  0x91   : > { %v1393_v47 = vcvt.s32.f32 %v1353_v40  ;;  %v1561_v49 = vsel %vm1531_vm1, %v1559_v36, %v1560_v41  ;;  %v1564_v50 = vrot.slane %v1469_v42, 6  ;;  %v1465_v51 = vadd.f32 -2.4182549, %v1425_v43 }
  0x92   : > { %v1432_v52 = vmul.f32 0.019666843, %v1392_v44  ;;  %1628 = vrot.lane.b32.xlu0 %v1561_v49, %s3862_s30  ;;  %1622 = vrot.lane.b32.xlu1 %v1554_v16, %s3862_s30  ;;  %v1351_v53 = vand.u32 255, %v1311_v48  ;;  %v1470_v38 = vadd.f32 -2.4182549, %v1430_v46  ;;  %v1563_v63 = vsel %vm1531_vm1, %v1560_v41, %v1562_v45 }
  0x93   : > { %v1565_v54 = vsel %vm1531_vm1, %v1562_v45, %v1564_v50  ;;  %v1557_v56 = vrot.slane %v1465_v51, 6  ;;  %v1433_v57 = vmul.f32 0.019666843, %v1393_v47  ;;  %v1314_v2 = vunpack.c.2.s8 %v4072_v14 }
  0x94   : > { %v1472_v58 = vadd.f32 -2.4182549, %v1432_v52  ;;  %v1391_v59 = vcvt.s32.f32 %v1351_v53  ;;  %v1566_v0 = vrot.slane %v1470_v38, 6  ;;  %v3863_v35 = vmov 1983009808  }
  0x95   : > { %v1558_v60 = vsel %vm1531_vm1, %v1555_v5, %v1557_v56  ;;  %v1473_v1 = vadd.f32 -2.4182549, %v1433_v57  ;;  %v1354_v7 = vand.u32 255, %v1314_v2  ;;  %v579_v36 = vunpack.c.l.s4 %v3863_v35 }
  0x96   : > { %1632 = vrot.lane.b32.xlu0 %v1565_v54, %s3862_s30  ;;  %1626 = vrot.lane.b32.xlu1 %v1558_v60, %s3862_s30  ;;  %v1431_v62 = vmul.f32 0.019666843, %v1391_v59  ;;  %v1569_v3 = vrot.slane %v1472_v58, 6  ;;  %v1567_v61 = vsel %vm1531_vm1, %v1564_v50, %v1566_v0  ;;  %v581_v37 = vlaneseq }
  0x97   : > { %v1571_v5 = vrot.slane %v1473_v1, 6  ;;  %v1394_v11 = vcvt.s32.f32 %v1354_v7  ;;  %v580_v41 = vunpack.c.0.s8 %v579_v36  ;;  %v3864_v43 = vmov 1934713408  }
  0x98   : > { %v1471_v6 = vadd.f32 -2.4182549, %v1431_v62  ;;  %v582_v42 = vshrl.u32 %v581_v37, 7  ;;  %v643_v44 = vunpack.c.l.s4 %v3864_v43  ;;  %v1315_v7 = vunpack.c.3.s8 %v4072_v14 }
  0x99   : > { %v1434_v13 = vmul.f32 0.019666843, %v1394_v11  ;;  %v1572_v9 = vsel %vm1531_vm1, %v1569_v3, %v1571_v5 }
  0x9a   : > { %1630 = vrot.lane.b32.xlu1 %v1563_v63, %s3862_s30  ;;  %v1568_v10 = vrot.slane %v1471_v6, 6  ;;  %v4139_v49 = vsub.s32 %v580_v41, %v582_v42  ;;  %v644_v52 = vunpack.c.0.s8 %v643_v44 }
  0x9b   : > { %v4104_v15 = vadd.f32 -2.4182549, %v1434_v13 }
  0x9c   : > { %v1570_v12 = vsel %vm1531_vm1, %v1568_v10, %v1569_v3  ;;  %v4153_v6 = vsub.s32 %v644_v52, %v582_v42 }
  0x9d   : > { %1636 = vrot.lane.b32.xlu0 %v1570_v12, %s3862_s30  ;;  %v1573_v16 = vrot.slane %v4104_v15, 6 }
  0x9e   : > { %1634 = vrot.lane.b32.xlu1 %v1567_v61, %s3862_s30 }
  0x9f   : > { %v4111_v17 = vsel %vm1531_vm1, %v1571_v5, %v1573_v16 }
  0xa2   : > { %1638 = vrot.lane.b32.xlu1 %v1572_v9, %s3862_s30 }
  0xab   : > { %v4113_v18 = vpop.permute.xlu1 %484 }
  0xac   : > { %v481_v19 = vpop.permute.xlu0 %480 }
  0xaf   : > { %v487_v20 = vpop.permute.xlu1 %486 }
  0xb0   : > { %v483_v21 = vpop.permute.xlu0 %482 }
  0xb3   : > { %v491_v55 = vpop.permute.xlu1 %490 }
  0xb4   : > { %v489_v22 = vpop.permute.xlu0 %488 }
  0xb7   : > { %v4115_v23 = vpop.permute.xlu1 %494 }
  0xb8   : > { %v4117_v24 = vpop.permute.xlu0 %492 }
  0xbb   : > { %v499_v25 = vpop.permute.xlu1 %498 }
  0xbc   : > { %v497_v26 = vpop.permute.xlu0 %496  ;;  %v712_v53 = vcombine.low %v483_v21, %v499_v25  ;;  %v713_v54 = vcombine.high %v483_v21, %v499_v25 }
  0xbd   : > { %v576_v50 = vcombine.low %v481_v19, %v497_v26  ;;  %v577_v56 = vcombine.high %v481_v19, %v497_v26 }
  0xbe   : > { %v4157_v10 = vrot.slane %v712_v53, %v4139_v49  ;;  %v4160_v61 = vrot.slane %v713_v54, %v4139_v49 }
  0xbf   : > { %v503_v27 = vpop.permute.xlu1 %502  ;;  %v584_v2 = vrot.slane %v576_v50, %v4139_v49  ;;  %v4163_v5 = vrot.slane %v577_v56, %v4139_v49 }
  0xc0   : > { %v501_v28 = vpop.permute.xlu0 %500  ;;  %v984_v58 = vcombine.low %v487_v20, %v503_v27  ;;  %v985_v59 = vcombine.high %v487_v20, %v503_v27 }
  0xc1   : > { %v848_v63 = vcombine.low %v4113_v18, %v501_v28  ;;  %v849_v0 = vcombine.high %v4113_v18, %v501_v28 }
  0xc2   : > { %v4171_v13 = vrot.slane %v984_v58, %v4139_v49  ;;  %v4174_v9 = vrot.slane %v985_v59, %v4139_v49 }
  0xc3   : > { %v507_v4 = vpop.permute.xlu1 %506  ;;  %v4179_v21 = vrot.slane %v848_v63, %v4139_v49 }
  0xc4   : > { %v505_v29 = vpop.permute.xlu0 %504  ;;  %v728_v51 = vcombine.low %v491_v55, %v507_v4  ;;  %v729_v38 = vcombine.high %v491_v55, %v507_v4  ;;  %v4182_v55 = vrot.slane %v849_v0, %v4139_v49 }
  0xc5   : > { %v592_v46 = vcombine.low %v489_v22, %v505_v29  ;;  %v593_v48 = vcombine.high %v489_v22, %v505_v29 }
  0xc6   : > { %v4151_v3 = vrot.slane %v728_v51, %v4139_v49  ;;  %v4166_v11 = vrot.slane %v729_v38, %v4139_v49 }
  0xc7   : > { %v4119_v30 = vpop.permute.xlu1 %510  ;;  %v600_v60 = vrot.slane %v592_v46, %v4139_v49  ;;  %v4147_v1 = vrot.slane %v593_v48, %v4139_v49 }
  0xc8   : > { %v4121_v31 = vpop.permute.xlu0 %508  ;;  %v1000_v25 = vcombine.low %v4115_v23, %v4119_v30  ;;  %v776_v26 = vcombine.low %v4157_v10, %v4151_v3  ;;  %v1001_v27 = vcombine.high %v4115_v23, %v4119_v30  ;;  %v777_v29 = vcombine.high %v4157_v10, %v4151_v3 }
  0xc9   : > { %v640_v18 = vcombine.low %v584_v2, %v600_v60  ;;  %v641_v19 = vcombine.high %v584_v2, %v600_v60  ;;  %v656_v22 = vcombine.low %v4163_v5, %v4147_v1  ;;  %v792_v35 = vcombine.low %v4160_v61, %v4166_v11 }
  0xca   : > { %v657_v36 = vcombine.high %v4163_v5, %v4147_v1  ;;  %v864_v37 = vcombine.low %v4117_v24, %v4121_v31  ;;  %v865_v23 = vcombine.high %v4117_v24, %v4121_v31  ;;  %v4213_v44 = vrot.slane %v1000_v25, %v4139_v49 }
  0xcb   : > { %v4123_v8 = vpop.permute.xlu1 %514  ;;  %v4207_v42 = vrot.slane %v641_v19, %v4153_v6  ;;  %v4210_v43 = vrot.slane %v640_v18, %v4153_v6  ;;  %v4218_v50 = vrot.slane %v656_v22, %v4153_v6  ;;  %v4221_v24 = vrot.slane %v1001_v27, %v4139_v49 }
  0xcc   : > { %v4125_v32 = vpop.permute.xlu0 %512 }
  0xcf   : > { %v4127_v33 = vpop.permute.xlu1 %518 }
  0xd0   : > { %v4129_v34 = vpop.permute.xlu0 %516 }
  0xd3   : > { %v4131_v39 = vpop.permute.xlu1 %522 }
  0xd4   : > { %v4133_v40 = vpop.permute.xlu0 %520 }
  0xd7   : > { %v4135_v45 = vpop.permute.xlu1 %526 }
  0xd8   : > { %v4137_v47 = vpop.permute.xlu0 %524 }
  0xdb   : > { %v4141_v57 = vpop.permute.xlu1 %530 }
  0xdc   : > { %v529_v62 = vpop.permute.xlu0 %528  ;;  %v744_v30 = vcombine.low %v4123_v8, %v4141_v57  ;;  %v745_v31 = vcombine.high %v4123_v8, %v4141_v57 }
  0xdd   : > { %v608_v28 = vcombine.low %v4125_v32, %v529_v62  ;;  %v609_v4 = vcombine.high %v4125_v32, %v529_v62 }
  0xde   : > { %v752_v58 = vrot.slane %v744_v30, %v4139_v49 }
  0xdf   : > { %v4168_v12 = vpop.permute.xlu1 %534  ;;  %v616_v51 = vrot.slane %v608_v28, %v4139_v49  ;;  %v623_v52 = vrot.slane %v609_v4, %v4139_v49 }
  0xe0   : > { %v4176_v20 = vpop.permute.xlu0 %532  ;;  %v1016_v59 = vcombine.low %v4127_v33, %v4168_v12  ;;  %v1017_v8 = vcombine.high %v4127_v33, %v4168_v12 }
  0xe1   : > { %v880_v57 = vcombine.low %v4129_v34, %v4176_v20 }
  0xe3   : > { %v539_v41 = vpop.permute.xlu1 %538 }
  0xe4   : > { %v537_v32 = vpop.permute.xlu0 %536  ;;  %v760_v53 = vcombine.low %v4131_v39, %v539_v41  ;;  %v761_v54 = vcombine.high %v4131_v39, %v539_v41  ;;  %v881_v39 = vcombine.high %v4129_v34, %v4176_v20 }
  0xe5   : > { %v624_v46 = vcombine.low %v4133_v40, %v537_v32  ;;  %v625_v48 = vcombine.high %v4133_v40, %v537_v32  ;;  %v4271_v32 = vrot.slane %v864_v37, %v4139_v49 }
  0xe6   : > { %v768_v33 = vrot.slane %v760_v53, %v4139_v49  ;;  %v4246_v12 = vrot.slane %v761_v54, %v4139_v49  ;;  %v4286_v53 = vrot.slane %v880_v57, %v4139_v49  ;;  %v4289_v54 = vrot.slane %v881_v39, %v4139_v49 }
  0xe7   : > { %v632_v56 = vrot.slane %v624_v46, %v4139_v49  ;;  %v639_v40 = vrot.slane %v625_v48, %v4139_v49  ;;  %v543_v38 = vpop.permute.xlu1 %542  ;;  %v4274_v46 = vrot.slane %v865_v23, %v4139_v49  ;;  %v4277_v48 = vrot.slane %v745_v31, %v4139_v49 }
  0xe8   : > { %v541_v60 = vpop.permute.xlu0 %540  ;;  %v1032_v2 = vcombine.low %v4135_v45, %v543_v38  ;;  %v1033_v18 = vcombine.high %v4135_v45, %v543_v38  ;;  %v808_v37 = vcombine.low %v752_v58, %v768_v33  ;;  %v809_v23 = vcombine.high %v752_v58, %v768_v33 }
  0xe9   : > { %v672_v62 = vcombine.low %v616_v51, %v632_v56  ;;  %v673_v63 = vcombine.high %v616_v51, %v632_v56  ;;  %v688_v0 = vcombine.low %v623_v52, %v639_v40  ;;  %v896_v19 = vcombine.low %v4137_v47, %v541_v60 }
  0xea   : > { %v897_v22 = vcombine.high %v4137_v47, %v541_v60  ;;  %v689_v20 = vcombine.high %v623_v52, %v639_v40  ;;  %v4253_v27 = vrot.slane %v1032_v2, %v4139_v49  ;;  %v4256_v45 = vrot.slane %v1033_v18, %v4139_v49 }
  0xeb   : > { %v687_v25 = vrot.slane %v673_v63, %v4153_v6  ;;  %v4250_v34 = vrot.slane %v672_v62, %v4153_v6  ;;  %v4259_v28 = vrot.slane %v688_v0, %v4153_v6  ;;  %v4262_v47 = vrot.slane %v896_v19, %v4139_v49 }
  0xec   : > { %v4265_v4 = vrot.slane %v897_v22, %v4139_v49  ;;  %v4280_v51 = vrot.slane %v1016_v59, %v4139_v49  ;;  %v4283_v52 = vrot.slane %v1017_v8, %v4139_v49  ;;  %v824_v31 = vcombine.low %v4277_v48, %v4246_v12 }
  0xed   : > { %v706_v41 = vcombine.low %v4207_v42, %v687_v25  ;;  %v705_v30 = vcombine.high %v4210_v43, %v4250_v34  ;;  %v709_v56 = vcombine.high %v4218_v50, %v4259_v28  ;;  %v703_v40 = vrot.slane %v689_v20, %v4153_v6 }
  0xee   : > { %v1080_v38 = vcombine.low %v4280_v51, %v4253_v27  ;;  %v1096_v59 = vcombine.low %v4283_v52, %v4256_v45  ;;  %v944_v58 = vcombine.low %v4286_v53, %v4262_v47  ;;  %v960_v8 = vcombine.low %v4289_v54, %v4265_v4 }
  0xef   : > { %1125 = vrot.lane.b32.xlu1 %v706_v41, %s3865_s3  ;;  %1121 = vrot.lane.b32.xlu0 %v705_v30, %s3866_s4  ;;  %v707_v57 = vcombine.high %v4207_v42, %v687_v25  ;;  %v671_v60 = vrot.slane %v657_v36, %v4153_v6  ;;  %v791_v39 = vrot.slane %v777_v29, %v4153_v6  ;;  %v4338_v36 = vpop.permute.xlu1 %1606 }
  0xf0   : > { %v4319_v62 = vrot.slane %v776_v26, %v4153_v6  ;;  %v1048_v63 = vcombine.low %v4171_v13, %v4213_v44  ;;  %v1064_v42 = vcombine.low %v4174_v9, %v4221_v24  ;;  %v912_v1 = vcombine.low %v4179_v21, %v4271_v32 }
  0xf1   : > { %v928_v5 = vcombine.low %v4182_v55, %v4274_v46  ;;  %v711_v3 = vcombine.high %v671_v60, %v703_v40  ;;  %v823_v10 = vrot.slane %v809_v23, %v4153_v6  ;;  %v4333_v26 = vrot.slane %v808_v37, %v4153_v6 }
  0xf2   : > { %v4336_v29 = vrot.slane %v824_v31, %v4153_v6  ;;  %v4341_v0 = vrot.slane %v944_v58, %v4153_v6  ;;  %v4344_v2 = vrot.slane %v960_v8, %v4153_v6  ;;  %v4347_v18 = vrot.slane %v1080_v38, %v4153_v6 }
  0xf3   : > { %1133 = vrot.lane.b32.xlu1 %v709_v56, %s3866_s4  ;;  %1129 = vrot.lane.b32.xlu0 %v707_v57, %s3867_s5  ;;  %v4350_v19 = vrot.slane %v1096_v59, %v4153_v6  ;;  %v710_v22 = vcombine.low %v671_v60, %v703_v40  ;;  %v4356_v33 = vrot.slane %v792_v35, %v4153_v6  ;;  %v1355_v60 = vand.u32 255, %v1315_v7  ;;  %v1281_v59 = vld [vmem:[%s3939_s29 + $0xb0] sm:$0x2] }
  0xf4   : > { %v704_v25 = vcombine.low %v4210_v43, %v4250_v34  ;;  %v708_v20 = vcombine.low %v4218_v50, %v4259_v28  ;;  %v4364_v41 = vrot.slane %v912_v1, %v4153_v6  ;;  %v4367_v30 = vrot.slane %v928_v5, %v4153_v6  ;;  %v1277_v5 = vld [vmem:[%s3939_s29 + $0x96] ss:$6 sps:$2 sm:$0xf]  }
  0xf5   : > { %v4370_v37 = vrot.slane %v1048_v63, %v4153_v6  ;;  %v4373_v35 = vrot.slane %v1064_v42, %v4153_v6  ;;  %v825_v23 = vcombine.high %v4277_v48, %v4246_v12  ;;  %v842_v31 = vcombine.low %v791_v39, %v823_v10 }
  0xf6   : > { %v840_v56 = vcombine.low %v4319_v62, %v4333_v26  ;;  %v844_v40 = vcombine.low %v4356_v33, %v4336_v29  ;;  %v841_v58 = vcombine.high %v4319_v62, %v4333_v26  ;;  %v793_v57 = vcombine.high %v4160_v61, %v4166_v11 }
  0xf7   : > { %1141 = vrot.lane.b32.xlu1 %v711_v3, %s3867_s5  ;;  %1137 = vrot.lane.b32.xlu0 %v710_v22, %s3865_s3  ;;  %v945_v63 = vcombine.high %v4286_v53, %v4262_v47  ;;  %v845_v42 = vcombine.high %v4356_v33, %v4336_v29  ;;  %v839_v1 = vrot.slane %v825_v23, %v4153_v6  ;;  %v4407_v3 = vld [vmem:[%s3939_s29 + $0x98] ss:$56 sps:$4 sm:$0xff]   ;;  %v1395_v11 = vcvt.s32.f32 %v1355_v60  ;;  %v1276_v47 = vld [vmem:[%s3939_s29 + $0x94] sm:$0x2] }
  0xf8   : > { %v4392_v8 = vpop.permute.xlu1 %1610  ;;  %v843_v22 = vcombine.high %v791_v39, %v823_v10  ;;  %v913_v14 = vcombine.high %v4179_v21, %v4271_v32  ;;  %v807_v7 = vrot.slane %v793_v57, %v4153_v6  ;;  %v3661_v53 = vunpack.c.0.s8 %v4407_v3 }
  0xf9   : > { %v1317_v23 = vunpack.c.0.s8 %v1277_v5  ;;  %v1316_v10 = vunpack.c.0.s8 %v1276_v47  ;;  %v1435_v32 = vmul.f32 0.019666843, %v1395_v11  ;;  %v1321_v15 = vunpack.c.0.s8 %v1281_v59 }
  0xfa   : > { %v846_v39 = vcombine.low %v807_v7, %v839_v1  ;;  %v927_v21 = vrot.slane %v913_v14, %v4153_v6  ;;  %v1358_v60 = vand.u32 255, %v3661_v53  ;;  %v929_v14 = vcombine.high %v4182_v55, %v4274_v46 }
  0xfb   : > { %1149 = vrot.lane.b32.xlu1 %v842_v31, %s3865_s3  ;;  %1145 = vrot.lane.b32.xlu0 %v841_v58, %s3866_s4  ;;  %v847_v31 = vcombine.high %v807_v7, %v839_v1  ;;  %v959_v58 = vrot.slane %v945_v63, %v4153_v6  ;;  %v1357_v57 = vand.u32 255, %v1317_v23  ;;  %v977_v63 = vcombine.high %v4364_v41, %v4341_v0 }
  0xfc   : > { %v4409_v61 = vpop.permute.xlu1 %1614  ;;  %v1356_v1 = vand.u32 255, %v1316_v10  ;;  %v3662_v7 = vunpack.c.1.s8 %v4407_v3  ;;  %v1475_v11 = vadd.f32 -2.4182549, %v1435_v32  ;;  %v981_v23 = vcombine.high %v4367_v30, %v4344_v2 }
  0xfd   : > { %v1397_v53 = vcvt.s32.f32 %v1357_v57  ;;  %v979_v10 = vcombine.high %v927_v21, %v959_v58  ;;  %v1049_v32 = vcombine.high %v4171_v13, %v4213_v44  ;;  %v943_v57 = vrot.slane %v929_v14, %v4153_v6 }
  0xfe   : > { %v1396_v12 = vcvt.s32.f32 %v1356_v1  ;;  %v1359_v55 = vand.u32 255, %v3662_v7  ;;  %v3670_v38 = vunpack.c.3.s8 %v4407_v3 }
  0xff   : > { %1157 = vrot.lane.b32.xlu1 %v845_v42, %s3866_s4  ;;  %1153 = vrot.lane.b32.xlu0 %v843_v22, %s3867_s5  ;;  %v961_v42 = vcombine.high %v4289_v54, %v4265_v4  ;;  %v978_v22 = vcombine.low %v927_v21, %v959_v58  ;;  %v1398_v4 = vcvt.s32.f32 %v1358_v60  ;;  %v1081_v54 = vcombine.high %v4280_v51, %v4253_v27  ;;  %v3724_v27 = vld [vmem:[%s3939_s29 + $0xb2] sm:$0xff]  }
 0x100   : > { %v4419_v48 = vpop.permute.xlu1 %1618  ;;  %v1575_v60 = vrot.slane %v1475_v11, 6  ;;  %v1437_v51 = vmul.f32 0.019666843, %v1397_v53  ;;  %v1399_v1 = vcvt.s32.f32 %v1359_v55  ;;  %v3665_v7 = vunpack.c.0.s8 %v3724_v27 }
 0x101   : > { %v1063_v44 = vrot.slane %v1049_v32, %v4153_v6  ;;  %v3666_v11 = vunpack.c.1.s8 %v3724_v27 }
 0x102   : > { %v4455_v14 = vsel %vm1531_vm1, %v1573_v16, %v1575_v60  ;;  %v4458_v53 = vadd.f32 -2.4182549, %v1437_v51  ;;  %v1113_v16 = vcombine.high %v4370_v37, %v4347_v18  ;;  %v1439_v55 = vmul.f32 0.019666843, %v1399_v1  ;;  %v1286_v1 = vld [vmem:[%s3939_s29 + $0xcc] sm:$0x2] }
 0x103   : > { %1165 = vrot.lane.b32.xlu1 %v847_v31, %s3867_s5  ;;  %1161 = vrot.lane.b32.xlu0 %v846_v39, %s3865_s3  ;;  %v975_v31 = vrot.slane %v961_v42, %v4153_v6  ;;  %v1320_v39 = vunpack.c.1.s8 %v1277_v5  ;;  %v1095_v5 = vrot.slane %v1081_v54, %v4153_v6  ;;  %v1362_v32 = vand.u32 255, %v3665_v7 }
 0x104   : > { %v4429_v47 = vpop.permute.xlu1 %1622  ;;  %v1065_v60 = vcombine.high %v4174_v9, %v4221_v24  ;;  %v1117_v9 = vcombine.high %v4373_v35, %v4350_v19 }
 0x105   : > { %v983_v42 = vcombine.high %v943_v57, %v975_v31  ;;  %v1360_v58 = vand.u32 255, %v1320_v39  ;;  %v982_v21 = vcombine.low %v943_v57, %v975_v31  ;;  %v1114_v31 = vcombine.low %v1063_v44, %v1095_v5 }
 0x107   : > { %1173 = vrot.lane.b32.xlu1 %v978_v22, %s3865_s3  ;;  %1169 = vrot.lane.b32.xlu0 %v977_v63, %s3866_s4  ;;  %v1438_v22 = vmul.f32 0.019666843, %v1398_v4  ;;  %v1436_v63 = vmul.f32 0.019666843, %v1396_v12  ;;  %v1400_v39 = vcvt.s32.f32 %v1360_v58  ;;  %v1361_v58 = vand.u32 255, %v1321_v15 }
 0x108   : > { %v1627_v46 = vpop.permute.xlu1 %1626 }
 0x109   : > { %v4460_v12 = vadd.f32 -2.4182549, %v1438_v22  ;;  %v2108_v4 = vcombine.low %v4392_v8, %v1627_v46  ;;  %v2109_v54 = vcombine.high %v4392_v8, %v1627_v46  ;;  %v1363_v8 = vand.u32 255, %v3666_v11 }
 0x10b   : > { %1181 = vrot.lane.b32.xlu1 %v981_v23, %s3866_s4  ;;  %1177 = vrot.lane.b32.xlu0 %v979_v10, %s3867_s5  ;;  %v1097_v23 = vcombine.high %v4283_v52, %v4256_v45  ;;  %v4468_v10 = vadd.f32 -2.4182549, %v1436_v63  ;;  %v1324_v45 = vunpack.c.2.s8 %v3724_v27  ;;  %v1325_v52 = vunpack.c.3.s8 %v3724_v27  ;;  %v1287_v27 = vld [vmem:[%s3939_s29 + $0xce] ss:$6 sps:$2 sm:$0xf]  }
 0x10c   : > { %v4448_v13 = vpop.permute.xlu1 %1630  ;;  %v4475_v59 = vrot.slane %v2108_v4, %v4139_v49  ;;  %v4478_v46 = vrot.slane %v2109_v54, %v4139_v49  ;;  %v1402_v63 = vcvt.s32.f32 %v1362_v32  ;;  %v1401_v32 = vcvt.s32.f32 %v1361_v58 }
 0x10d   : > { %v1111_v24 = vrot.slane %v1097_v23, %v4153_v6  ;;  %v1364_v4 = vand.u32 255, %v1324_v45  ;;  %v1365_v54 = vand.u32 255, %v1325_v52  ;;  %v3669_v23 = vunpack.c.2.s8 %v4407_v3 }
 0x10e   : > { %v1580_v45 = vrot.slane %v4460_v12, 6  ;;  %v1479_v52 = vadd.f32 -2.4182549, %v1439_v55  ;;  %v1577_v58 = vrot.slane %v4468_v10, 6 }
 0x10f   : > { %1189 = vrot.lane.b32.xlu1 %v983_v42, %s3867_s5  ;;  %1185 = vrot.lane.b32.xlu0 %v982_v21, %s3865_s3  ;;  %v1440_v42 = vmul.f32 0.019666843, %v1400_v39  ;;  %v1115_v21 = vcombine.high %v1063_v44, %v1095_v5  ;;  %v1327_v5 = vunpack.c.0.s8 %v1287_v27 }
 0x110   : > { %v1635_v57 = vpop.permute.xlu1 %1634  ;;  %v1582_v55 = vrot.slane %v1479_v52, 6 }
 0x111   : > { %v2124_v51 = vcombine.low %v4419_v48, %v1635_v57  ;;  %v2125_v22 = vcombine.high %v4419_v48, %v1635_v57  ;;  %v1079_v48 = vrot.slane %v1065_v60, %v4153_v6  ;;  %v1326_v57 = vunpack.c.0.s8 %v1286_v1 }
 0x112   : > { %v1367_v39 = vand.u32 255, %v1327_v5 }
 0x113   : > { %1197 = vrot.lane.b32.xlu1 %v1114_v31, %s3865_s3  ;;  %1193 = vrot.lane.b32.xlu0 %v1113_v16, %s3866_s4  ;;  %v4488_v7 = vrot.slane %v2124_v51, %v4139_v49  ;;  %v4491_v11 = vrot.slane %v2125_v22, %v4139_v49  ;;  %v1403_v31 = vcvt.s32.f32 %v1363_v8  ;;  %v1119_v15 = vcombine.high %v1079_v48, %v1111_v24 }
 0x114   : > { %v1578_v16 = vrot.slane %v4458_v53, 6  ;;  %v1118_v60 = vcombine.low %v1079_v48, %v1111_v24  ;;  %v1442_v51 = vmul.f32 0.019666843, %v1402_v63  ;;  %v1480_v8 = vadd.f32 -2.4182549, %v1440_v42 }
 0x115   : > { %v1404_v22 = vcvt.s32.f32 %v1364_v4  ;;  %v1443_v44 = vmul.f32 0.019666843, %v1403_v31  ;;  %v1330_v53 = vunpack.c.1.s8 %v1287_v27  ;;  %v1441_v24 = vmul.f32 0.019666843, %v1401_v32 }
 0x116   : > { %v1366_v1 = vand.u32 255, %v1326_v57  ;;  %v1581_v12 = vsel %vm1531_vm1, %v1578_v16, %v1580_v45  ;;  %v1482_v63 = vadd.f32 -2.4182549, %v1442_v51  ;;  %v1584_v42 = vrot.slane %v1480_v8, 6 }
 0x117   : > { %1205 = vrot.lane.b32.xlu1 %v1117_v9, %s3866_s4  ;;  %1201 = vrot.lane.b32.xlu0 %v1115_v21, %s3867_s5  ;;  %v1405_v9 = vcvt.s32.f32 %v1365_v54  ;;  %v1368_v21 = vand.u32 255, %v3669_v23  ;;  %v1444_v48 = vmul.f32 0.019666843, %v1404_v22  ;;  %v1483_v3 = vadd.f32 -2.4182549, %v1443_v44 }
 0x118   : > { %v1407_v27 = vcvt.s32.f32 %v1367_v39  ;;  %v1369_v23 = vand.u32 255, %v3670_v38  ;;  %v1370_v10 = vand.u32 255, %v1330_v53  ;;  %v1579_v31 = vsel %vm1531_vm1, %v1577_v58, %v1578_v16 }
 0x119   : > { %v1445_v4 = vmul.f32 0.019666843, %v1405_v9  ;;  %v1408_v54 = vcvt.s32.f32 %v1368_v21  ;;  %v1481_v5 = vadd.f32 -2.4182549, %v1441_v24  ;;  %v1587_v32 = vrot.slane %v1482_v63, 6 }
 0x11a   : > { %v1484_v57 = vadd.f32 -2.4182549, %v1444_v48  ;;  %v1589_v51 = vrot.slane %v1483_v3, 6  ;;  %v1409_v44 = vcvt.s32.f32 %v1369_v23  ;;  %v1410_v39 = vcvt.s32.f32 %v1370_v10 }
 0x11b   : > { %1213 = vrot.lane.b32.xlu1 %v1119_v15, %s3867_s5  ;;  %1209 = vrot.lane.b32.xlu0 %v1118_v60, %s3865_s3  ;;  %v1406_v15 = vcvt.s32.f32 %v1366_v1  ;;  %v1485_v60 = vadd.f32 -2.4182549, %v1445_v4  ;;  %v1448_v52 = vmul.f32 0.019666843, %v1408_v54  ;;  %v1583_v38 = vsel %vm1531_vm1, %v1580_v45, %v1582_v55 }
 0x11c   : > { %v1586_v8 = vrot.slane %v1481_v5, 6  ;;  %v1591_v22 = vrot.slane %v1484_v57, 6  ;;  %v1590_v53 = vsel %vm1531_vm1, %v1587_v32, %v1589_v51  ;;  %v1449_v24 = vmul.f32 0.019666843, %v1409_v44 }
 0x11d   : > { %v1446_v16 = vmul.f32 0.019666843, %v1406_v15  ;;  %v1593_v9 = vrot.slane %v1485_v60, 6  ;;  %v1488_v21 = vadd.f32 -2.4182549, %v1448_v52 }
 0x11e   : > { %v1450_v1 = vmul.f32 0.019666843, %v1410_v39  ;;  %v1489_v48 = vadd.f32 -2.4182549, %v1449_v24  ;;  %v1592_v54 = vsel %vm1531_vm1, %v1589_v51, %v1591_v22  ;;  %v4551_v39 = vpop.permute.xlu1 %1638 }
 0x11f   : > { %1642 = vrot.lane.b32.xlu1 %v4455_v14, %s3862_s30  ;;  %1640 = vrot.lane.b32.xlu0 %v4111_v17, %s3862_s30  ;;  %v1585_v14 = vsel %vm1531_vm1, %v1582_v55, %v1584_v42  ;;  %v1447_v17 = vmul.f32 0.019666843, %v1407_v27  ;;  %v1486_v63 = vadd.f32 -2.4182549, %v1446_v16  ;;  %v1594_v45 = vsel %vm1531_vm1, %v1591_v22, %v1593_v9  ;;  %v4525_v27 = vpop.permute.xlu0 %1604 }
 0x120   : > { %v1598_v42 = vrot.slane %v1488_v21, 6  ;;  %v1490_v4 = vadd.f32 -2.4182549, %v1450_v1  ;;  %v1600_v10 = vrot.slane %v1489_v48, 6 }
 0x121   : > { %v1487_v58 = vadd.f32 -2.4182549, %v1447_v17  ;;  %v1595_v3 = vrot.slane %v1486_v63, 6 }
 0x123   : > { %1646 = vrot.lane.b32.xlu1 %v1581_v12, %s3862_s30  ;;  %1644 = vrot.lane.b32.xlu0 %v1579_v31, %s3862_s30  ;;  %v1588_v12 = vsel %vm1531_vm1, %v1586_v8, %v1587_v32  ;;  %v1596_v55 = vrot.slane %v1487_v58, 6  ;;  %v1602_v31 = vrot.slane %v1490_v4, 6  ;;  %v4532_v15 = vpop.permute.xlu0 %1608 }
 0x125   : > { %v1599_v23 = vsel %vm1531_vm1, %v1596_v55, %v1598_v42  ;;  %v1597_v5 = vsel %vm1531_vm1, %v1595_v3, %v1596_v55  ;;  %v1603_v32 = vsel %vm1531_vm1, %v1600_v10, %v1602_v31  ;;  %v5558_v3 = vcombine.low %v4364_v41, %v4341_v0 }
 0x127   : > { %1650 = vrot.lane.b32.xlu1 %v1585_v14, %s3862_s30  ;;  %1648 = vrot.lane.b32.xlu0 %v1583_v38, %s3862_s30  ;;  %v1601_v14 = vsel %vm1531_vm1, %v1598_v42, %v1600_v10  ;;  %v4539_v57 = vpop.permute.xlu0 %1612 }
 0x12b   : > { %1654 = vrot.lane.b32.xlu1 %v1590_v53, %s3862_s30  ;;  %1652 = vrot.lane.b32.xlu0 %v1588_v12, %s3862_s30  ;;  %v4541_v60 = vpop.permute.xlu0 %1616 }
 0x12f   : > { %1658 = vrot.lane.b32.xlu1 %v1594_v45, %s3862_s30  ;;  %1656 = vrot.lane.b32.xlu0 %v1592_v54, %s3862_s30  ;;  %v4543_v52 = vpop.permute.xlu0 %1620 }
 0x133   : > { %1662 = vrot.lane.b32.xlu1 %v1599_v23, %s3862_s30  ;;  %1660 = vrot.lane.b32.xlu0 %v1597_v5, %s3862_s30  ;;  %v4545_v51 = vpop.permute.xlu0 %1624  ;;  %v5559_v5 = vcombine.low %v4367_v30, %v4344_v2 }
 0x137   : > { %1666 = vrot.lane.b32.xlu1 %v1603_v32, %s3862_s30  ;;  %1664 = vrot.lane.b32.xlu0 %v1601_v14, %s3862_s30  ;;  %v4547_v17 = vpop.permute.xlu0 %1628 }
 0x13b   : > { %v4549_v44 = vpop.permute.xlu0 %1632 }
 0x13f   : > { %v4553_v38 = vpop.permute.xlu0 %1636 }
 0x161   : > { %v1126_v8 = vpop.permute.xlu1 %1125  ;;  %v1122_v16 = vpop.permute.xlu0 %1121 }
 0x162   : > { %v1217_v22 = vsel %vm1216_vm2, %v704_v25, %v1122_v16 }
 0x163   : > { %v1219_v21 = vsel %vm1218_vm3, %v1217_v22, %v1126_v8  ;;  %v5560_v22 = vcombine.low %v4370_v37, %v4347_v18  ;;  %v1700_v37 = vcombine.low %v4525_v27, %v4543_v52 }
 0x165   : > { %v1134_v9 = vpop.permute.xlu1 %1133  ;;  %v1130_v53 = vpop.permute.xlu0 %1129 }
 0x166   : > { %v1221_v58 = vsel %vm1220_vm4, %v1219_v21, %v1130_v53  ;;  %v1222_v43 = vsel %vm1216_vm2, %v708_v20, %v1134_v9 }
 0x167   : > { %1243 = vst [vmem:[%s4564_s8] sm:$0xff] %v1221_v58 }
 0x169   : > { %v1142_v24 = vpop.permute.xlu1 %1141  ;;  %v1138_v34 = vpop.permute.xlu0 %1137 }
 0x16a   : > { %v1223_v25 = vsel %vm1218_vm3, %v1222_v43, %v1138_v34 }
 0x16b   : > { %v1224_v1 = vsel %vm1220_vm4, %v1223_v25, %v1142_v24  ;;  %v5561_v24 = vcombine.low %v4373_v35, %v4350_v19  ;;  %v1717_v19 = vcombine.high %v4539_v57, %v4547_v17 }
 0x16c   : > { %1244 = vst [vmem:[%s4564_s8 + $0x8] sm:$0xff] %v1224_v1  ;;  %v1716_v1 = vcombine.low %v4539_v57, %v4547_v17 }
 0x16d   : > { %v1150_v12 = vpop.permute.xlu1 %1149  ;;  %v1146_v63 = vpop.permute.xlu0 %1145  ;;  %v1731_v17 = vrot.slane %v1717_v19, %v4139_v49 }
 0x16e   : > { %v1225_v45 = vsel %vm1216_vm2, %v840_v56, %v1146_v63  ;;  %v1701_v63 = vcombine.high %v4525_v27, %v4543_v52  ;;  %v1724_v27 = vrot.slane %v1716_v1, %v4139_v49 }
 0x16f   : > { %v1226_v42 = vsel %vm1218_vm3, %v1225_v45, %v1150_v12  ;;  %v1972_v45 = vcombine.low %v4532_v15, %v4545_v51 }
 0x170   : > { %v1715_v52 = vrot.slane %v1701_v63, %v4139_v49 }
 0x171   : > { %v1158_v55 = vpop.permute.xlu1 %1157  ;;  %v1154_v50 = vpop.permute.xlu0 %1153 }
 0x172   : > { %v1227_v28 = vsel %vm1220_vm4, %v1226_v42, %v1154_v50  ;;  %v1228_v48 = vsel %vm1216_vm2, %v844_v40, %v1158_v55  ;;  %v1988_v55 = vcombine.low %v4541_v60, %v4549_v44  ;;  %v1973_v42 = vcombine.high %v4532_v15, %v4545_v51 }
 0x173   : > { %1245 = vst [vmem:[%s4564_s8 + $0x10] sm:$0xff] %v1227_v28  ;;  %v1989_v50 = vcombine.high %v4541_v60, %v4549_v44  ;;  %v1708_v28 = vrot.slane %v1700_v37, %v4139_v49  ;;  %v1852_v15 = vcombine.low %v4409_v61, %v4448_v13  ;;  %v1980_v60 = vrot.slane %v1972_v45, %v4139_v49 }
 0x174   : > { %v1837_v44 = vcombine.high %v4338_v36, %v4429_v47 }
 0x175   : > { %v1166_v20 = vpop.permute.xlu1 %1165  ;;  %v1162_v4 = vpop.permute.xlu0 %1161 }
 0x176   : > { %v1229_v54 = vsel %vm1218_vm3, %v1228_v48, %v1162_v4  ;;  %v1996_v48 = vrot.slane %v1988_v55, %v4139_v49  ;;  %v1853_v4 = vcombine.high %v4409_v61, %v4448_v13 }
 0x177   : > { %v1230_v62 = vsel %vm1220_vm4, %v1229_v54, %v1166_v20  ;;  %v1836_v20 = vcombine.low %v4338_v36, %v4429_v47  ;;  %v1987_v54 = vrot.slane %v1973_v42, %v4139_v49  ;;  %v1860_v36 = vrot.slane %v1852_v15, %v4139_v49 }
 0x178   : > { %1246 = vst [vmem:[%s4564_s8 + $0x18] sm:$0xff] %v1230_v62  ;;  %v2003_v62 = vrot.slane %v1989_v50, %v4139_v49  ;;  %v2037_v61 = vcombine.high %v1980_v60, %v1996_v48  ;;  %v4667_v13 = vrot.slane %v1853_v4, %v4139_v49 }
 0x179   : > { %v1174_v26 = vpop.permute.xlu1 %1173  ;;  %v1170_v56 = vpop.permute.xlu0 %1169 }
 0x17a   : > { %v1231_v23 = vsel %vm1216_vm2, %v5558_v3, %v1170_v56  ;;  %v1765_v56 = vcombine.high %v1708_v28, %v1724_v27 }
 0x17b   : > { %v1232_v31 = vsel %vm1218_vm3, %v1231_v23, %v1174_v26  ;;  %v1764_v26 = vcombine.low %v1708_v28, %v1724_v27  ;;  %v3726_v23 = vld [vmem:[%s3939_s29 + $0x12] sm:$0xff]  }
 0x17c   : > { %v2415_v45 = vunpack.c.3.s8 %v3726_v23 }
 0x17d   : > { %v1182_v10 = vpop.permute.xlu1 %1181  ;;  %v1178_v29 = vpop.permute.xlu0 %1177 }
 0x17e   : > { %v1233_v33 = vsel %vm1220_vm4, %v1232_v31, %v1178_v29  ;;  %v1234_v32 = vsel %vm1216_vm2, %v5559_v5, %v1182_v10  ;;  %v1780_v10 = vcombine.low %v1715_v52, %v1731_v17  ;;  %v1781_v31 = vcombine.high %v1715_v52, %v1731_v17 }
 0x17f   : > { %1247 = vst [vmem:[%s4564_s8 + $0x20] sm:$0xff] %v1233_v33  ;;  %v1844_v29 = vrot.slane %v1836_v20, %v4139_v49  ;;  %v4664_v33 = vrot.slane %v1837_v44, %v4139_v49  ;;  %v2052_v5 = vcombine.low %v1987_v54, %v2003_v62 }
 0x181   : > { %v1190_v40 = vpop.permute.xlu1 %1189  ;;  %v1186_v14 = vpop.permute.xlu0 %1185  ;;  %v4696_v37 = vrot.slane %v2052_v5, %v4153_v6  ;;  %v1917_v1 = vcombine.high %v4664_v33, %v4667_v13 }
 0x182   : > { %v1235_v8 = vsel %vm1218_vm3, %v1234_v32, %v1186_v14  ;;  %v3673_v32 = vunpack.c.0.s8 %v3726_v23  ;;  %v2053_v14 = vcombine.high %v1987_v54, %v2003_v62  ;;  %v4729_v54 = vld [vmem:[%s3939_s29 + $0x2e] ss:$6 sps:$2 sm:$0xf]  }
 0x183   : > { %v1236_v0 = vsel %vm1220_vm4, %v1235_v8, %v1190_v40  ;;  %v2036_v40 = vcombine.low %v1980_v60, %v1996_v48  ;;  %v4720_v60 = vld [vmem:[%s3939_s29 + $0x30] ss:$56 sps:$4 sm:$0xff]  }
 0x184   : > { %1248 = vst [vmem:[%s4564_s8 + $0x28] sm:$0xff] %v1236_v0  ;;  %v4670_v0 = vrot.slane %v1765_v56, %v4153_v6  ;;  %v4703_v55 = vrot.slane %v2053_v14, %v4153_v6  ;;  %v3677_v5 = vunpack.c.0.s8 %v4720_v60 }
 0x185   : > { %v1198_v41 = vpop.permute.xlu1 %1197  ;;  %v1194_v16 = vpop.permute.xlu0 %1193 }
 0x186   : > { %v1237_v9 = vsel %vm1216_vm2, %v5560_v22, %v1194_v16  ;;  %v3674_v16 = vunpack.c.1.s8 %v3726_v23  ;;  %v1901_v22 = vcombine.high %v1844_v29, %v1860_v36 }
 0x187   : > { %v1238_v53 = vsel %vm1218_vm3, %v1237_v9, %v1198_v41  ;;  %v4673_v41 = vrot.slane %v1764_v26, %v4153_v6 }
 0x188   : > { %v4700_v19 = vand.u32 255, %v3674_v16  ;;  %v4708_v27 = vrot.slane %v1901_v22, %v4153_v6 }
 0x189   : > { %v1206_v21 = vpop.permute.xlu1 %1205  ;;  %v1202_v2 = vpop.permute.xlu0 %1201 }
 0x18a   : > { %v1239_v30 = vsel %vm1220_vm4, %v1238_v53, %v1202_v2  ;;  %v1240_v43 = vsel %vm1216_vm2, %v5561_v24, %v1206_v21  ;;  %v4676_v21 = vrot.slane %v1780_v10, %v4153_v6  ;;  %v4679_v53 = vrot.slane %v1781_v31, %v4153_v6 }
 0x18b   : > { %1249 = vst [vmem:[%s4564_s8 + $0x30] sm:$0xff] %v1239_v30  ;;  %v2414_v2 = vunpack.c.2.s8 %v3726_v23  ;;  %v1900_v30 = vcombine.low %v1844_v29, %v1860_v36  ;;  %v2172_v24 = vcombine.low %v4475_v59, %v4488_v7  ;;  %v2493_v10 = vcvt.s32.f32 %v4700_v19  ;;  %v4740_v29 = vld [vmem:[%s3939_s29 + $0x1a] sm:$0x1] }
 0x18c   : > { %v4737_v31 = vand.u32 255, %v2415_v45 }
 0x18d   : > { %v1214_v58 = vpop.permute.xlu1 %1213  ;;  %v1210_v34 = vpop.permute.xlu0 %1209  ;;  %v4710_v52 = vand.u32 255, %v2414_v2  ;;  %v4714_v20 = vrot.slane %v1900_v30, %v4153_v6  ;;  %v4723_v44 = vrot.slane %v2172_v24, %v4153_v6 }
 0x18e   : > { %v1241_v25 = vsel %vm1218_vm3, %v1240_v43, %v1210_v34  ;;  %v4686_v43 = vrot.slane %v2037_v61, %v4153_v6  ;;  %v2188_v34 = vcombine.low %v4478_v46, %v4491_v11 }
 0x18f   : > { %v1242_v18 = vsel %vm1220_vm4, %v1241_v25, %v1214_v58  ;;  %v1916_v58 = vcombine.low %v4664_v33, %v4667_v13  ;;  %v4691_v25 = vrot.slane %v2036_v40, %v4153_v6  ;;  %5562 = vst [vmem:[#allocation8_spill] sm:$0xff] %v4723_v44  ;;  %v2494_v40 = vcvt.s32.f32 %v4710_v52 }
 0x190   : > { %1250 = vst [vmem:[%s4564_s8 + $0x38] sm:$0xff] %v1242_v18  ;;  %v4693_v18 = vand.u32 255, %v3673_v32  ;;  %v4732_v62 = vrot.slane %v2188_v34, %v4153_v6 }
 0x191   : > { %v4620_v12 = vpop.permute.xlu1 %1642  ;;  %v4626_v35 = vpop.permute.xlu0 %1640  ;;  %v4717_v15 = vrot.slane %v1916_v58, %v4153_v6 }
 0x192   : > { %v2492_v4 = vcvt.s32.f32 %v4693_v18  ;;  %5563 = vst [vmem:[#allocation9_spill] sm:$0xff] %v4732_v62 }
 0x195   : > { %v4638_v57 = vpop.permute.xlu1 %1646  ;;  %v4646_v51 = vpop.permute.xlu0 %1644 }
 0x199   : > { %v4656_v3 = vpop.permute.xlu1 %1650  ;;  %v4661_v47 = vpop.permute.xlu0 %1648 }
 0x19d   : > { %v1655_v8 = vpop.permute.xlu1 %1654  ;;  %v1653_v9 = vpop.permute.xlu0 %1652 }
 0x19e   : > { %v1869_v48 = vcombine.high %v4551_v39, %v1655_v8  ;;  %v1732_v26 = vcombine.low %v4553_v38, %v1653_v9  ;;  %v1733_v56 = vcombine.high %v4553_v38, %v1653_v9  ;;  %v2416_v9 = vunpack.c.0.s8 %v4740_v29 }
 0x1a0   : > { %v4752_v22 = vrot.slane %v1869_v48, %v4139_v49  ;;  %v1740_v2 = vrot.slane %v1732_v26, %v4139_v49  ;;  %v1747_v30 = vrot.slane %v1733_v56, %v4139_v49 }
 0x1a1   : > { %v1659_v63 = vpop.permute.xlu1 %1658  ;;  %v1657_v28 = vpop.permute.xlu0 %1656 }
 0x1a2   : > { %v2140_v42 = vcombine.low %v4620_v12, %v1659_v63  ;;  %v2141_v50 = vcombine.high %v4620_v12, %v1659_v63  ;;  %v2005_v17 = vcombine.high %v4626_v35, %v1657_v28  ;;  %v1868_v12 = vcombine.low %v4551_v39, %v1655_v8 }
 0x1a3   : > { %v2004_v39 = vcombine.low %v4626_v35, %v1657_v28  ;;  %v2417_v8 = vunpack.c.0.s8 %v4729_v54 }
 0x1a4   : > { %v1876_v16 = vrot.slane %v1868_v12, %v4139_v49  ;;  %v2148_v24 = vrot.slane %v2140_v42, %v4139_v49  ;;  %v2155_v34 = vrot.slane %v2141_v50, %v4139_v49  ;;  %v2019_v63 = vrot.slane %v2005_v17, %v4139_v49 }
 0x1a5   : > { %v1663_v23 = vpop.permute.xlu1 %1662  ;;  %v1661_v61 = vpop.permute.xlu0 %1660  ;;  %v4763_v18 = vrot.slane %v2004_v39, %v4139_v49 }
 0x1a6   : > { %v1884_v36 = vcombine.low %v4638_v57, %v1663_v23  ;;  %v1885_v32 = vcombine.high %v4638_v57, %v1663_v23  ;;  %v1748_v38 = vcombine.low %v4646_v51, %v1661_v61  ;;  %v1749_v14 = vcombine.high %v4646_v51, %v1661_v61 }
 0x1a8   : > { %v1892_v35 = vrot.slane %v1884_v36, %v4139_v49  ;;  %v1756_v57 = vrot.slane %v1748_v38, %v4139_v49  ;;  %v1763_v58 = vrot.slane %v1749_v14, %v4139_v49  ;;  %v4767_v45 = vrot.slane %v1885_v32, %v4139_v49 }
 0x1a9   : > { %v1667_v51 = vpop.permute.xlu1 %1666  ;;  %v1665_v19 = vpop.permute.xlu0 %1664 }
 0x1aa   : > { %v1796_v28 = vcombine.low %v1740_v2, %v1756_v57  ;;  %v1797_v52 = vcombine.high %v1740_v2, %v1756_v57  ;;  %v1812_v12 = vcombine.low %v1747_v30, %v1763_v58  ;;  %v1932_v48 = vcombine.low %v1876_v16, %v1892_v35 }
 0x1ab   : > { %v2156_v26 = vcombine.low %v4656_v3, %v1667_v51  ;;  %v2157_v56 = vcombine.high %v4656_v3, %v1667_v51  ;;  %v2020_v42 = vcombine.low %v4661_v47, %v1665_v19  ;;  %v1933_v50 = vcombine.high %v1876_v16, %v1892_v35 }
 0x1ac   : > { %v2021_v23 = vcombine.high %v4661_v47, %v1665_v19  ;;  %v1811_v29 = vrot.slane %v1797_v52, %v4153_v6  ;;  %v4775_v17 = vrot.slane %v1796_v28, %v4153_v6  ;;  %v1813_v39 = vcombine.high %v1747_v30, %v1763_v58 }
 0x1ad   : > { %v2164_v36 = vrot.slane %v2156_v26, %v4139_v49  ;;  %v2171_v61 = vrot.slane %v2157_v56, %v4139_v49  ;;  %v4780_v32 = vrot.slane %v2020_v42, %v4139_v49  ;;  %v4787_v14 = vrot.slane %v1812_v12, %v4153_v6 }
 0x1ae   : > { %v2035_v3 = vrot.slane %v2021_v23, %v4139_v49  ;;  %v1830_v38 = vcombine.low %v4670_v0, %v1811_v29  ;;  %v1829_v47 = vcombine.high %v4673_v41, %v4775_v17  ;;  %v1948_v57 = vcombine.low %v4752_v22, %v4767_v45 }
 0x1af   : > { %v2204_v16 = vcombine.low %v2148_v24, %v2164_v36  ;;  %v2205_v35 = vcombine.high %v2148_v24, %v2164_v36  ;;  %v2220_v2 = vcombine.low %v2155_v34, %v2171_v61  ;;  %v2221_v30 = vcombine.high %v2155_v34, %v2171_v61 }
 0x1b0   : > { %v2068_v58 = vcombine.low %v4763_v18, %v4780_v32  ;;  %v2084_v51 = vcombine.low %v2019_v63, %v2035_v3  ;;  %v2085_v19 = vcombine.high %v2019_v63, %v2035_v3  ;;  %2249 = vrot.lane.b32.xlu1 %v1830_v38, %s3865_s3  ;;  %2245 = vrot.lane.b32.xlu0 %v1829_v47, %s3866_s4  ;;  %v2532_v28 = vmul.f32 0.019510292, %v2492_v4 }
 0x1b1   : > { %v2533_v52 = vmul.f32 0.019510292, %v2493_v10  ;;  %v5564_v24 = vcombine.high %v4478_v46, %v4491_v11  ;;  %v5565_v34 = vcombine.high %v4475_v59, %v4488_v7  ;;  %v1833_v63 = vcombine.high %v4676_v21, %v4787_v14 }
 0x1b2   : > { %v1827_v56 = vrot.slane %v1813_v39, %v4153_v6  ;;  %v2495_v4 = vcvt.s32.f32 %v4737_v31  ;;  %v2534_v10 = vmul.f32 0.019510292, %v2494_v40  ;;  %v1831_v42 = vcombine.high %v4670_v0, %v1811_v29 }
 0x1b3   : > { %v4799_v12 = vrot.slane %v5564_v24, %v4153_v6  ;;  %v4805_v26 = vrot.slane %v5565_v34, %v4153_v6  ;;  %v4813_v46 = vrot.slane %v1933_v50, %v4153_v6  ;;  %v2457_v11 = vand.u32 255, %v2417_v8 }
 0x1b4   : > { %v2458_v23 = vand.u32 255, %v3677_v5  ;;  %v4816_v36 = vrot.slane %v2068_v58, %v4153_v6  ;;  %2257 = vrot.lane.b32.xlu1 %v1833_v63, %s3866_s4  ;;  %v4820_v59 = vrot.slane %v1932_v48, %v4153_v6  ;;  %v4823_v7 = vrot.slane %v1948_v57, %v4153_v6  ;;  %2253 = vrot.lane.b32.xlu0 %v1831_v42, %s3867_s5 }
 0x1b5   : > { %v2456_v31 = vand.u32 255, %v2416_v9  ;;  %v4826_v40 = vrot.slane %v2204_v16, %v4153_v6  ;;  %v4829_v0 = vrot.slane %v2220_v2, %v4153_v6  ;;  %v4832_v5 = vrot.slane %v2221_v30, %v4153_v6 }
 0x1b6   : > { %v4835_v8 = vrot.slane %v2084_v51, %v4153_v6  ;;  %v4839_v48 = vrot.slane %v2205_v35, %v4153_v6  ;;  %v4842_v9 = vrot.slane %v2085_v19, %v4153_v6  ;;  %v1835_v50 = vcombine.high %v4679_v53, %v1827_v56 }
 0x1b7   : > { %5566 = vst [vmem:[#allocation10_spill] sm:$0xff] %v4826_v40  ;;  %5567 = vst [vmem:[#allocation11_spill] sm:$0xff] %v4829_v0  ;;  %v3678_v29 = vunpack.c.1.s8 %v4720_v60  ;;  %v1949_v39 = vcombine.high %v4752_v22, %v4767_v45  ;;  %v1834_v61 = vcombine.low %v4679_v53, %v1827_v56  ;;  %v1966_v3 = vcombine.low %v4708_v27, %v4813_v46  ;;  %v4864_v22 = vld [vmem:[%s3939_s29 + $0x4a] sm:$0xff]   ;;  %v2381_v45 = vld [vmem:[%s3939_s29 + $0x36] sm:$0x1] }
 0x1b8   : > { %v1828_v38 = vcombine.low %v4673_v41, %v4775_v17  ;;  %2265 = vrot.lane.b32.xlu1 %v1835_v50, %s3867_s5  ;;  %v1832_v47 = vcombine.low %v4676_v21, %v4787_v14  ;;  %v1964_v16 = vcombine.low %v4714_v20, %v4820_v59  ;;  %v1965_v34 = vcombine.high %v4714_v20, %v4820_v59 }
 0x1b9   : > { %2261 = vrot.lane.b32.xlu0 %v1834_v61, %s3865_s3  ;;  %v1931_v63 = vrot.slane %v1917_v1, %v4153_v6  ;;  %v2535_v56 = vmul.f32 0.019510292, %v2495_v4  ;;  %v2420_v42 = vunpack.c.1.s8 %v4729_v54  ;;  %v2572_v50 = vadd.f32 -2.221393, %v2532_v28 }
 0x1ba   : > { %v2497_v61 = vcvt.s32.f32 %v2457_v11  ;;  %v2498_v30 = vcvt.s32.f32 %v2458_v23  ;;  %v3681_v2 = vunpack.c.0.s8 %v4864_v22  ;;  %v4893_v24 = vadd.f32 -2.221393, %v2533_v52 }
 0x1bb   : > { %v4895_v19 = vadd.f32 -2.221393, %v2534_v10  ;;  %v2496_v51 = vcvt.s32.f32 %v2456_v31  ;;  %v2459_v33 = vand.u32 255, %v3678_v29  ;;  %v1963_v13 = vrot.slane %v1949_v39, %v4153_v6 }
 0x1bc   : > { %2273 = vrot.lane.b32.xlu1 %v1966_v3, %s3865_s3  ;;  %v2069_v1 = vcombine.high %v4763_v18, %v4780_v32  ;;  %v1969_v54 = vcombine.high %v4717_v15, %v4823_v7  ;;  %v3682_v28 = vunpack.c.1.s8 %v4864_v22  ;;  %v1967_v4 = vcombine.high %v4708_v27, %v4813_v46 }
 0x1bd   : > { %2269 = vrot.lane.b32.xlu0 %v1965_v34, %s3866_s4  ;;  %v4905_v11 = vadd.f32 -2.221393, %v2535_v56  ;;  %v2460_v52 = vand.u32 255, %v2420_v42  ;;  %v2421_v10 = vunpack.c.0.s8 %v2381_v45  ;;  %v2652_v23 = vrot.slane %v2572_v50, 2 }
 0x1be   : > { %v2537_v31 = vmul.f32 0.019510292, %v2497_v61  ;;  %v2538_v29 = vmul.f32 0.019510292, %v2498_v30  ;;  %v2462_v39 = vand.u32 255, %v3681_v2  ;;  %v2653_v18 = vrot.slane %v4893_v24, 2 }
 0x1bf   : > { %v2655_v32 = vrot.slane %v4895_v19, 2  ;;  %v2536_v3 = vmul.f32 0.019510292, %v2496_v51  ;;  %v2499_v34 = vcvt.s32.f32 %v2459_v33  ;;  %v2083_v27 = vrot.slane %v2069_v1, %v4153_v6  ;;  %v2387_v30 = vld [vmem:[%s3939_s29 + $0x66] ss:$6 sps:$2 sm:$0xf]  }
 0x1c0   : > { %2281 = vrot.lane.b32.xlu1 %v1969_v54, %s3866_s4  ;;  %v1971_v46 = vcombine.high %v1931_v63, %v1963_v13  ;;  %v2463_v56 = vand.u32 255, %v3682_v28  ;;  %v2424_v45 = vunpack.c.2.s8 %v4864_v22  ;;  %v1970_v42 = vcombine.low %v1931_v63, %v1963_v13  ;;  %v2386_v13 = vld [vmem:[%s3939_s29 + $0x52] sm:$0x1] }
 0x1c1   : > { %2277 = vrot.lane.b32.xlu0 %v1967_v4, %s3867_s5  ;;  %v2500_v50 = vcvt.s32.f32 %v2460_v52  ;;  %v2461_v61 = vand.u32 255, %v2421_v10  ;;  %v2425_v2 = vunpack.c.3.s8 %v4864_v22  ;;  %v2657_v24 = vrot.slane %v4905_v11, 2 }
 0x1c2   : > { %v2577_v19 = vadd.f32 -2.221393, %v2537_v31  ;;  %v4917_v51 = vadd.f32 -2.221393, %v2538_v29  ;;  %v2502_v33 = vcvt.s32.f32 %v2462_v39  ;;  %v2654_v1 = vsel %vm407_vm0, %v2652_v23, %v2653_v18 }
 0x1c3   : > { %v2576_v54 = vadd.f32 -2.221393, %v2536_v3  ;;  %v2539_v28 = vmul.f32 0.019510292, %v2499_v34  ;;  %v3685_v63 = vunpack.c.2.s8 %v4720_v60  ;;  %v2102_v22 = vcombine.low %v4686_v43, %v2083_v27 }
 0x1c4   : > { %2289 = vrot.lane.b32.xlu1 %v1971_v46, %s3867_s5  ;;  %v2503_v4 = vcvt.s32.f32 %v2463_v56  ;;  %v2464_v52 = vand.u32 255, %v2424_v45  ;;  %v2427_v10 = vunpack.c.0.s8 %v2387_v30  ;;  %v2101_v11 = vcombine.high %v4691_v25, %v4816_v36 }
 0x1c5   : > { %2285 = vrot.lane.b32.xlu0 %v1970_v42, %s3865_s3  ;;  %v2540_v31 = vmul.f32 0.019510292, %v2500_v50  ;;  %v2501_v29 = vcvt.s32.f32 %v2461_v61  ;;  %v2465_v39 = vand.u32 255, %v2425_v2  ;;  %v2658_v23 = vsel %vm407_vm0, %v2655_v32, %v2657_v24 }
 0x1c6   : > { %v2661_v3 = vrot.slane %v2577_v19, 2  ;;  %v2542_v34 = vmul.f32 0.019510292, %v2502_v33  ;;  %v2426_v46 = vunpack.c.0.s8 %v2386_v13  ;;  %v2662_v42 = vrot.slane %v4917_v51, 2 }
 0x1c7   : > { %v2579_v56 = vadd.f32 -2.221393, %v2539_v28  ;;  %v2468_v45 = vand.u32 255, %v3685_v63  ;;  %v3686_v58 = vunpack.c.3.s8 %v4720_v60  ;;  %v2659_v57 = vrot.slane %v2576_v54, 2  ;;  %v3730_v63 = vld [vmem:[%s3939_s29 + $0x82] sm:$0xff]  }
 0x1c8   : > { %2297 = vrot.lane.b32.xlu1 %v2102_v22, %s3865_s3  ;;  %v2543_v50 = vmul.f32 0.019510292, %v2503_v4  ;;  %v2504_v61 = vcvt.s32.f32 %v2464_v52  ;;  %v2467_v2 = vand.u32 255, %v2427_v10  ;;  %v2103_v22 = vcombine.high %v4686_v43, %v2083_v27 }
 0x1c9   : > { %2293 = vrot.lane.b32.xlu0 %v2101_v11, %s3866_s4  ;;  %v2580_v53 = vadd.f32 -2.221393, %v2540_v31  ;;  %v2541_v35 = vmul.f32 0.019510292, %v2501_v29  ;;  %v2505_v19 = vcvt.s32.f32 %v2465_v39  ;;  %v2656_v33 = vsel %vm407_vm0, %v2653_v18, %v2655_v32 }
 0x1ca   : > { %v2582_v51 = vadd.f32 -2.221393, %v2542_v34  ;;  %v2466_v28 = vand.u32 255, %v2426_v46  ;;  %v2430_v13 = vunpack.c.1.s8 %v2387_v30  ;;  %v2663_v60 = vsel %vm407_vm0, %v2661_v3, %v2662_v42 }
 0x1cb   : > { %v2664_v54 = vrot.slane %v2579_v56, 2  ;;  %v2508_v4 = vcvt.s32.f32 %v2468_v45  ;;  %v2469_v52 = vand.u32 255, %v3686_v58  ;;  %v2660_v43 = vsel %vm407_vm0, %v2657_v24, %v2659_v57 }
 0x1cc   : > { %2724 = vrot.lane.b32.xlu1 %v2654_v1, %s3862_s30  ;;  %v4938_v27 = vadd.f32 -2.221393, %v2543_v50  ;;  %v2544_v10 = vmul.f32 0.019510292, %v2504_v61  ;;  %v2507_v11 = vcvt.s32.f32 %v2467_v2  ;;  %v2391_v1 = vld [vmem:[%s3939_s29 + $0x6e] sm:$0x1]  ;;  %v3689_v29 = vunpack.c.0.s8 %v3730_v63 }
 0x1cd   : > { %2301 = vrot.lane.b32.xlu0 %v2103_v22, %s3867_s5  ;;  %v2666_v31 = vrot.slane %v2580_v53, 2  ;;  %v2581_v18 = vadd.f32 -2.221393, %v2541_v35  ;;  %v2545_v32 = vmul.f32 0.019510292, %v2505_v19  ;;  %v2670_v30 = vrot.slane %v2582_v51, 2 }
 0x1ce   : > { %v2506_v39 = vcvt.s32.f32 %v2466_v28  ;;  %v2470_v3 = vand.u32 255, %v2430_v13  ;;  %v3690_v34 = vunpack.c.1.s8 %v3730_v63  ;;  %v2548_v58 = vmul.f32 0.019510292, %v2508_v4  ;;  %v4948_v22 = vld [vmem:[%s3939_s29 + $0xa0] ss:$56 sps:$4 sm:$0xff]  }
 0x1cf   : > { %v2509_v57 = vcvt.s32.f32 %v2469_v52  ;;  %v2431_v24 = vunpack.c.0.s8 %v2391_v1  ;;  %v2434_v46 = vunpack.c.2.s8 %v3730_v63  ;;  %v2671_v56 = vrot.slane %v4938_v27, 2  ;;  %v2397_v13 = vld [vmem:[%s3939_s29 + $0x9e] ss:$6 sps:$2 sm:$0xf]  }
 0x1d0   : > { %2728 = vrot.lane.b32.xlu1 %v2658_v23, %s3862_s30  ;;  %v2584_v53 = vadd.f32 -2.221393, %v2544_v10  ;;  %v2547_v35 = vmul.f32 0.019510292, %v2507_v11  ;;  %v2435_v45 = vunpack.c.3.s8 %v3730_v63  ;;  %v2665_v50 = vsel %vm407_vm0, %v2662_v42, %v2664_v54 }
 0x1d1   : > { %2726 = vrot.lane.b32.xlu0 %v2656_v33, %s3862_s30  ;;  %v2668_v23 = vrot.slane %v2581_v18, 2  ;;  %v4945_v61 = vadd.f32 -2.221393, %v2545_v32  ;;  %v2472_v2 = vand.u32 255, %v3689_v29  ;;  %v2667_v19 = vsel %vm407_vm0, %v2664_v54, %v2666_v31  ;;  %v2396_v29 = vld [vmem:[%s3939_s29 + $0x8a] sm:$0x1] }
 0x1d2   : > { %v2546_v33 = vmul.f32 0.019510292, %v2506_v39  ;;  %v2510_v51 = vcvt.s32.f32 %v2470_v3  ;;  %v2473_v28 = vand.u32 255, %v3690_v34  ;;  %v2588_v63 = vadd.f32 -2.221393, %v2548_v58 }
 0x1d3   : > { %v2549_v4 = vmul.f32 0.019510292, %v2509_v57  ;;  %v2471_v42 = vand.u32 255, %v2431_v24  ;;  %v2474_v52 = vand.u32 255, %v2434_v46  ;;  %v2672_v27 = vsel %vm407_vm0, %v2670_v30, %v2671_v56 }
 0x1d4   : > { %2732 = vrot.lane.b32.xlu1 %v2663_v60, %s3862_s30  ;;  %v2587_v10 = vadd.f32 -2.221393, %v2547_v35  ;;  %v2475_v11 = vand.u32 255, %v2435_v45  ;;  %v3693_v1 = vunpack.c.0.s8 %v4948_v22  ;;  %v2669_v60 = vsel %vm407_vm0, %v2666_v31, %v2668_v23 }
 0x1d5   : > { %2730 = vrot.lane.b32.xlu0 %v2660_v43, %s3862_s30  ;;  %v2673_v54 = vrot.slane %v2584_v53, 2  ;;  %v2512_v18 = vcvt.s32.f32 %v2472_v2  ;;  %v2437_v32 = vunpack.c.0.s8 %v2397_v13  ;;  %v2675_v43 = vrot.slane %v4945_v61, 2 }
 0x1d6   : > { %v2586_v39 = vadd.f32 -2.221393, %v2546_v33  ;;  %v2550_v3 = vmul.f32 0.019510292, %v2510_v51  ;;  %v2513_v34 = vcvt.s32.f32 %v2473_v28  ;;  %v2680_v30 = vrot.slane %v2588_v63, 2  ;;  %v3732_v28 = vld [vmem:[%s3939_s29 + $0xba] sm:$0xff]  }
 0x1d7   : > { %v2589_v58 = vadd.f32 -2.221393, %v2549_v4  ;;  %v2511_v57 = vcvt.s32.f32 %v2471_v42  ;;  %v2514_v24 = vcvt.s32.f32 %v2474_v52  ;;  %v2679_v46 = vrot.slane %v2587_v10, 2 }
 0x1d8   : > { %2736 = vrot.lane.b32.xlu1 %v2667_v19, %s3862_s30  ;;  %v2515_v31 = vcvt.s32.f32 %v2475_v11  ;;  %v2478_v53 = vand.u32 255, %v3693_v1  ;;  %v2436_v35 = vunpack.c.0.s8 %v2396_v29  ;;  %v2674_v45 = vsel %vm407_vm0, %v2671_v56, %v2673_v54 }
 0x1d9   : > { %2734 = vrot.lane.b32.xlu0 %v2665_v50, %s3862_s30  ;;  %v2552_v23 = vmul.f32 0.019510292, %v2512_v18  ;;  %v2477_v2 = vand.u32 255, %v2437_v32  ;;  %v3694_v61 = vunpack.c.1.s8 %v4948_v22  ;;  %v2677_v19 = vrot.slane %v2586_v39, 2  ;;  %v2401_v39 = vld [vmem:[%s3939_s29 + $0xa6] sm:$0x1] }
 0x1da   : > { %v4964_v33 = vadd.f32 -2.221393, %v2550_v3  ;;  %v2553_v50 = vmul.f32 0.019510292, %v2513_v34  ;;  %v2440_v51 = vunpack.c.1.s8 %v2397_v13  ;;  %v2676_v63 = vsel %vm407_vm0, %v2673_v54, %v2675_v43 }
 0x1db   : > { %v2682_v4 = vrot.slane %v2589_v58, 2  ;;  %v2551_v42 = vmul.f32 0.019510292, %v2511_v57  ;;  %v2554_v56 = vmul.f32 0.019510292, %v2514_v24  ;;  %v2681_v52 = vsel %vm407_vm0, %v2679_v46, %v2680_v30 }
 0x1dc   : > { %2740 = vrot.lane.b32.xlu1 %v2672_v27, %s3862_s30  ;;  %v2555_v10 = vmul.f32 0.019510292, %v2515_v31  ;;  %v2518_v11 = vcvt.s32.f32 %v2478_v53  ;;  %v2476_v1 = vand.u32 255, %v2436_v35  ;;  %v2592_v27 = vadd.f32 -2.221393, %v2552_v23 }
 0x1dd   : > { %2738 = vrot.lane.b32.xlu0 %v2669_v60, %s3862_s30  ;;  %v2517_v18 = vcvt.s32.f32 %v2477_v2  ;;  %v2479_v32 = vand.u32 255, %v3694_v61  ;;  %v3697_v29 = vunpack.c.0.s8 %v3732_v28  ;;  %v2678_v13 = vsel %vm407_vm0, %v2675_v43, %v2677_v19 }
 0x1de   : > { %v2684_v60 = vrot.slane %v4964_v33, 2  ;;  %v4974_v54 = vadd.f32 -2.221393, %v2553_v50  ;;  %v2480_v3 = vand.u32 255, %v2440_v51  ;;  %v2683_v34 = vsel %vm407_vm0, %v2680_v30, %v2682_v4 }
 0x1df   : > { %v2591_v58 = vadd.f32 -2.221393, %v2551_v42  ;;  %v2594_v57 = vadd.f32 -2.221393, %v2554_v56  ;;  %v3698_v24 = vunpack.c.1.s8 %v3732_v28  ;;  %v4978_v46 = vadd.f32 -2.221393, %v2555_v10 }
 0x1e0   : > { %2744 = vrot.lane.b32.xlu1 %v2676_v63, %s3862_s30  ;;  %v2558_v31 = vmul.f32 0.019510292, %v2518_v11  ;;  %v2516_v53 = vcvt.s32.f32 %v2476_v1  ;;  %v2441_v35 = vunpack.c.0.s8 %v2401_v39  ;;  %v2688_v23 = vrot.slane %v2592_v27, 2  ;;  %v2407_v56 = vld [vmem:[%s3939_s29 + $0xd6] ss:$6 sps:$2 sm:$0xf]  }
 0x1e1   : > { %2742 = vrot.lane.b32.xlu0 %v2674_v45, %s3862_s30  ;;  %v2557_v43 = vmul.f32 0.019510292, %v2517_v18  ;;  %v2519_v2 = vcvt.s32.f32 %v2479_v32  ;;  %v2482_v61 = vand.u32 255, %v3697_v29  ;;  %v2689_v19 = vrot.slane %v4974_v54, 2  ;;  %v2406_v29 = vld [vmem:[%s3939_s29 + $0xc2] sm:$0x1] }
 0x1e2   : > { %v2520_v45 = vcvt.s32.f32 %v2480_v3  ;;  %v2444_v30 = vunpack.c.2.s8 %v3732_v28  ;;  %v2445_v33 = vunpack.c.3.s8 %v3732_v28  ;;  %v2685_v50 = vsel %vm407_vm0, %v2682_v4, %v2684_v60 }
 0x1e3   : > { %v2686_v51 = vrot.slane %v2591_v58, 2  ;;  %v2691_v63 = vrot.slane %v2594_v57, 2  ;;  %v2483_v42 = vand.u32 255, %v3698_v24  ;;  %v2693_v10 = vrot.slane %v4978_v46, 2 }
 0x1e4   : > { %2748 = vrot.lane.b32.xlu1 %v2681_v52, %s3862_s30  ;;  %v4986_v11 = vadd.f32 -2.221393, %v2558_v31  ;;  %v2556_v1 = vmul.f32 0.019510292, %v2516_v53  ;;  %v2481_v52 = vand.u32 255, %v2441_v35  ;;  %v2522_v32 = vcvt.s32.f32 %v2482_v61 }
 0x1e5   : > { %2746 = vrot.lane.b32.xlu0 %v2678_v13, %s3862_s30  ;;  %v2597_v27 = vadd.f32 -2.221393, %v2557_v43  ;;  %v2559_v18 = vmul.f32 0.019510292, %v2519_v2  ;;  %v2560_v28 = vmul.f32 0.019510292, %v2520_v45  ;;  %v2447_v4 = vunpack.c.0.s8 %v2407_v56 }
 0x1e6   : > { %v2484_v39 = vand.u32 255, %v2444_v30  ;;  %v2485_v13 = vand.u32 255, %v2445_v33  ;;  %v2690_v54 = vsel %vm407_vm0, %v2688_v23, %v2689_v19  ;;  %v2687_v3 = vsel %vm407_vm0, %v2684_v60, %v2686_v51 }
 0x1e7   : > { %v2523_v58 = vcvt.s32.f32 %v2483_v42  ;;  %v3701_v57 = vunpack.c.2.s8 %v4948_v22  ;;  %v2698_v24 = vrot.slane %v4986_v11, 2  ;;  %v2596_v46 = vadd.f32 -2.221393, %v2556_v1 }
 0x1e8   : > { %2752 = vrot.lane.b32.xlu1 %v2685_v50, %s3862_s30  ;;  %v2521_v31 = vcvt.s32.f32 %v2481_v52  ;;  %v2446_v53 = vunpack.c.0.s8 %v2406_v29  ;;  %v2694_v35 = vsel %vm407_vm0, %v2691_v63, %v2693_v10  ;;  %v2697_v43 = vrot.slane %v2597_v27, 2  ;;  %v2411_v29 = vld [vmem:[%s3939_s29 + $0xde] sm:$0x1] }
 0x1e9   : > { %2750 = vrot.lane.b32.xlu0 %v2683_v34, %s3862_s30  ;;  %v2599_v2 = vadd.f32 -2.221393, %v2559_v18  ;;  %v2562_v61 = vmul.f32 0.019510292, %v2522_v32  ;;  %v2600_v34 = vadd.f32 -2.221393, %v2560_v28  ;;  %v2524_v23 = vcvt.s32.f32 %v2484_v39 }
 0x1ea   : > { %v2525_v45 = vcvt.s32.f32 %v2485_v13  ;;  %v2487_v60 = vand.u32 255, %v2447_v4  ;;  %v2563_v30 = vmul.f32 0.019510292, %v2523_v58  ;;  %v2488_v33 = vand.u32 255, %v3701_v57 }
 0x1eb   : > { %v3702_v50 = vunpack.c.3.s8 %v4948_v22  ;;  %v2450_v51 = vunpack.c.1.s8 %v2407_v56  ;;  %v2692_v42 = vsel %vm407_vm0, %v2689_v19, %v2691_v63  ;;  %v2695_v11 = vrot.slane %v2596_v46, 2 }
 0x1ec   : > { %2756 = vrot.lane.b32.xlu1 %v2690_v54, %s3862_s30  ;;  %v2561_v1 = vmul.f32 0.019510292, %v2521_v31  ;;  %v2486_v52 = vand.u32 255, %v2446_v53  ;;  %v2699_v27 = vsel %vm407_vm0, %v2697_v43, %v2698_v24  ;;  %v2700_v18 = vrot.slane %v2599_v2, 2 }
 0x1ed   : > { %2754 = vrot.lane.b32.xlu0 %v2687_v3, %s3862_s30  ;;  %v2602_v32 = vadd.f32 -2.221393, %v2562_v61  ;;  %v2702_v28 = vrot.slane %v2600_v34, 2  ;;  %v2564_v39 = vmul.f32 0.019510292, %v2524_v23  ;;  %v2527_v4 = vcvt.s32.f32 %v2487_v60 }
 0x1ee   : > { %v2565_v13 = vmul.f32 0.019510292, %v2525_v45  ;;  %v2603_v22 = vadd.f32 -2.221393, %v2563_v30  ;;  %v2528_v56 = vcvt.s32.f32 %v2488_v33  ;;  %v2489_v54 = vand.u32 255, %v3702_v50 }
 0x1ef   : > { %v2490_v19 = vand.u32 255, %v2450_v51  ;;  %v2696_v63 = vsel %vm407_vm0, %v2693_v10, %v2695_v11  ;;  %v2601_v3 = vadd.f32 -2.221393, %v2561_v1  ;;  %v2526_v58 = vcvt.s32.f32 %v2486_v52 }
 0x1f0   : > { %2760 = vrot.lane.b32.xlu1 %v2694_v35, %s3862_s30  ;;  %v2451_v57 = vunpack.c.0.s8 %v2411_v29  ;;  %v2706_v46 = vrot.slane %v2602_v32, 2  ;;  %v2703_v31 = vsel %vm407_vm0, %v2700_v18, %v2702_v28  ;;  %v2604_v53 = vadd.f32 -2.221393, %v2564_v39 }
 0x1f1   : > { %2758 = vrot.lane.b32.xlu0 %v2692_v42, %s3862_s30  ;;  %v2605_v35 = vadd.f32 -2.221393, %v2565_v13  ;;  %v2567_v43 = vmul.f32 0.019510292, %v2527_v4  ;;  %v2707_v2 = vrot.slane %v2603_v22, 2  ;;  %v2529_v34 = vcvt.s32.f32 %v2489_v54 }
 0x1f2   : > { %v2568_v61 = vmul.f32 0.019510292, %v2528_v56  ;;  %v2530_v23 = vcvt.s32.f32 %v2490_v19  ;;  %v2701_v45 = vsel %vm407_vm0, %v2698_v24, %v2700_v18  ;;  %v2704_v10 = vrot.slane %v2601_v3, 2 }
 0x1f3   : > { %v2566_v60 = vmul.f32 0.019510292, %v2526_v58  ;;  %v2491_v30 = vand.u32 255, %v2451_v57  ;;  %v2709_v33 = vrot.slane %v2604_v53, 2  ;;  %v2711_v50 = vrot.slane %v2605_v35, 2 }
 0x1f4   : > { %2764 = vrot.lane.b32.xlu1 %v2699_v27, %s3862_s30  ;;  %v2607_v51 = vadd.f32 -2.221393, %v2567_v43  ;;  %v2708_v42 = vsel %vm407_vm0, %v2706_v46, %v2707_v2  ;;  %v2608_v11 = vadd.f32 -2.221393, %v2568_v61  ;;  %v2569_v1 = vmul.f32 0.019510292, %v2529_v34 }
 0x1f5   : > { %2762 = vrot.lane.b32.xlu0 %v2696_v63, %s3862_s30  ;;  %v2570_v52 = vmul.f32 0.019510292, %v2530_v23  ;;  %v2705_v27 = vsel %vm407_vm0, %v2702_v28, %v2704_v10  ;;  %v2606_v32 = vadd.f32 -2.221393, %v2566_v60  ;;  %v2531_v29 = vcvt.s32.f32 %v2491_v30 }
 0x1f6   : > { %v2712_v24 = vsel %vm407_vm0, %v2709_v33, %v2711_v50  ;;  %v2715_v18 = vrot.slane %v2607_v51, 2  ;;  %v2716_v39 = vrot.slane %v2608_v11, 2  ;;  %v2609_v13 = vadd.f32 -2.221393, %v2569_v1 }
 0x1f7   : > { %v2610_v4 = vadd.f32 -2.221393, %v2570_v52  ;;  %v2710_v22 = vsel %vm407_vm0, %v2707_v2, %v2709_v33  ;;  %v2713_v56 = vrot.slane %v2606_v32, 2  ;;  %v2571_v54 = vmul.f32 0.019510292, %v2531_v29 }
 0x1f8   : > { %2768 = vrot.lane.b32.xlu1 %v2703_v31, %s3862_s30  ;;  %v2717_v28 = vsel %vm407_vm0, %v2715_v18, %v2716_v39  ;;  %v2718_v19 = vrot.slane %v2609_v13, 2  ;;  %v2105_v53 = vcombine.high %v4696_v37, %v4835_v8  ;;  %v2237_v43 = vcombine.high %v4723_v44, %v4826_v40 }
 0x1f9   : > { %2766 = vrot.lane.b32.xlu0 %v2701_v45, %s3862_s30  ;;  %v2720_v63 = vrot.slane %v2610_v4, 2  ;;  %v2714_v3 = vsel %vm407_vm0, %v2711_v50, %v2713_v56  ;;  %v2611_v58 = vadd.f32 -2.221393, %v2571_v54  ;;  %v2106_v2 = vcombine.low %v4703_v55, %v4842_v9 }
 0x1fa   : > { %v2719_v46 = vsel %vm407_vm0, %v2716_v39, %v2718_v19  ;;  %v2241_v61 = vcombine.high %v4732_v62, %v4829_v0  ;;  %v5568_v32 = vcombine.low %v4717_v15, %v4823_v7  ;;  %v5569_v39 = vcombine.low %v4691_v25, %v4816_v36 }
 0x1fb   : > { %v2721_v57 = vsel %vm407_vm0, %v2718_v19, %v2720_v63  ;;  %v2722_v31 = vrot.slane %v2611_v58, 2 }
 0x1fc   : > { %2772 = vrot.lane.b32.xlu1 %v2708_v42, %s3862_s30 }
 0x1fd   : > { %2770 = vrot.lane.b32.xlu0 %v2705_v27, %s3862_s30  ;;  %v2723_v35 = vsel %vm407_vm0, %v2720_v63, %v2722_v31 }
 0x200   : > { %2776 = vrot.lane.b32.xlu1 %v2712_v24, %s3862_s30 }
 0x201   : > { %2774 = vrot.lane.b32.xlu0 %v2710_v22, %s3862_s30 }
 0x204   : > { %2780 = vrot.lane.b32.xlu1 %v2717_v28, %s3862_s30 }
 0x205   : > { %2778 = vrot.lane.b32.xlu0 %v2714_v3, %s3862_s30 }
 0x208   : > { %2784 = vrot.lane.b32.xlu1 %v2721_v57, %s3862_s30 }
 0x209   : > { %2782 = vrot.lane.b32.xlu0 %v2719_v46, %s3862_s30 }
 0x20c   : > { %2305 = vrot.lane.b32.xlu1 %v2105_v53, %s3866_s4 }
 0x20d   : > { %2786 = vrot.lane.b32.xlu0 %v2723_v35, %s3862_s30 }
 0x210   : > { %2317 = vrot.lane.b32.xlu1 %v2237_v43, %s3866_s4 }
 0x211   : > { %2309 = vrot.lane.b32.xlu0 %v2106_v2, %s3865_s3 }
 0x215   : > { %2329 = vrot.lane.b32.xlu0 %v2241_v61, %s3866_s4 }
 0x222   : > { %v2250_v34 = vpop.permute.xlu1 %2249  ;;  %v2246_v23 = vpop.permute.xlu0 %2245 }
 0x223   : > { %v2340_v45 = vsel %vm1216_vm2, %v1828_v38, %v2246_v23 }
 0x224   : > { %v2341_v60 = vsel %vm1218_vm3, %v2340_v45, %v2250_v34 }
 0x226   : > { %v2258_v10 = vpop.permute.xlu1 %2257  ;;  %v2254_v30 = vpop.permute.xlu0 %2253 }
 0x227   : > { %v2342_v33 = vsel %vm1220_vm4, %v2341_v60, %v2254_v30  ;;  %v2343_v51 = vsel %vm1216_vm2, %v1832_v47, %v2258_v10 }
 0x228   : > { %2364 = vst [vmem:[%s4564_s8 + $0x40] sm:$0xff] %v2342_v33 }
 0x22a   : > { %v2266_v50 = vpop.permute.xlu1 %2265 }
 0x22b   : > { %v2262_v42 = vpop.permute.xlu0 %2261 }
 0x22c   : > { %v2344_v11 = vsel %vm1218_vm3, %v2343_v51, %v2262_v42 }
 0x22d   : > { %v2345_v41 = vsel %vm1220_vm4, %v2344_v11, %v2266_v50 }
 0x22e   : > { %2365 = vst [vmem:[%s4564_s8 + $0x48] sm:$0xff] %v2345_v41  ;;  %v2274_v17 = vpop.permute.xlu1 %2273 }
 0x22f   : > { %v2270_v38 = vpop.permute.xlu0 %2269 }
 0x230   : > { %v2346_v1 = vsel %vm1216_vm2, %v1964_v16, %v2270_v38 }
 0x231   : > { %v2347_v27 = vsel %vm1218_vm3, %v2346_v1, %v2274_v17 }
 0x232   : > { %v2282_v52 = vpop.permute.xlu1 %2281 }
 0x233   : > { %v2278_v21 = vpop.permute.xlu0 %2277  ;;  %v2349_v29 = vsel %vm1216_vm2, %v5568_v32, %v2282_v52 }
 0x234   : > { %v2348_v14 = vsel %vm1220_vm4, %v2347_v27, %v2278_v21 }
 0x235   : > { %2366 = vst [vmem:[%s4564_s8 + $0x50] sm:$0xff] %v2348_v14 }
 0x236   : > { %v2290_v47 = vpop.permute.xlu1 %2289 }
 0x237   : > { %v2286_v24 = vpop.permute.xlu0 %2285 }
 0x238   : > { %v2350_v18 = vsel %vm1218_vm3, %v2349_v29, %v2286_v24 }
 0x239   : > { %v2351_v20 = vsel %vm1220_vm4, %v2350_v18, %v2290_v47 }
 0x23a   : > { %2367 = vst [vmem:[%s4564_s8 + $0x58] sm:$0xff] %v2351_v20  ;;  %v2298_v59 = vpop.permute.xlu1 %2297 }
 0x23b   : > { %v2294_v16 = vpop.permute.xlu0 %2293 }
 0x23c   : > { %v2352_v13 = vsel %vm1216_vm2, %v5569_v39, %v2294_v16 }
 0x23d   : > { %v2353_v22 = vsel %vm1218_vm3, %v2352_v13, %v2298_v59 }
 0x23e   : > { %v2725_v4 = vpop.permute.xlu1 %2724 }
 0x23f   : > { %v2302_v56 = vpop.permute.xlu0 %2301 }
 0x240   : > { %v2354_v15 = vsel %vm1220_vm4, %v2353_v22, %v2302_v56 }
 0x241   : > { %2368 = vst [vmem:[%s4564_s8 + $0x60] sm:$0xff] %v2354_v15 }
 0x242   : > { %v2729_v7 = vpop.permute.xlu1 %2728 }
 0x243   : > { %v2727_v54 = vpop.permute.xlu0 %2726 }
 0x246   : > { %v2733_v28 = vpop.permute.xlu1 %2732 }
 0x247   : > { %v5076_v19 = vpop.permute.xlu0 %2730 }
 0x24a   : > { %v2737_v63 = vpop.permute.xlu1 %2736 }
 0x24b   : > { %v2735_v3 = vpop.permute.xlu0 %2734 }
 0x24e   : > { %v2741_v58 = vpop.permute.xlu1 %2740 }
 0x24f   : > { %v5078_v57 = vpop.permute.xlu0 %2738  ;;  %v2820_v50 = vcombine.low %v2725_v4, %v2741_v58  ;;  %v2821_v51 = vcombine.high %v2725_v4, %v2741_v58 }
 0x251   : > { %v5103_v38 = vrot.slane %v2820_v50, %v4139_v49  ;;  %v5106_v1 = vrot.slane %v2821_v51, %v4139_v49 }
 0x252   : > { %v2745_v25 = vpop.permute.xlu1 %2744 }
 0x253   : > { %v2743_v36 = vpop.permute.xlu0 %2742  ;;  %v3092_v52 = vcombine.low %v2729_v7, %v2745_v25  ;;  %v3093_v27 = vcombine.high %v2729_v7, %v2745_v25 }
 0x254   : > { %v2956_v21 = vcombine.low %v2727_v54, %v2743_v36  ;;  %v2957_v14 = vcombine.high %v2727_v54, %v2743_v36 }
 0x255   : > { %v5113_v4 = vrot.slane %v3092_v52, %v4139_v49  ;;  %v5116_v22 = vrot.slane %v3093_v27, %v4139_v49 }
 0x256   : > { %v2749_v46 = vpop.permute.xlu1 %2748  ;;  %v5119_v56 = vrot.slane %v2956_v21, %v4139_v49  ;;  %v5122_v15 = vrot.slane %v2957_v14, %v4139_v49 }
 0x257   : > { %v5080_v31 = vpop.permute.xlu0 %2746  ;;  %v2836_v60 = vcombine.low %v2733_v28, %v2749_v46  ;;  %v2837_v30 = vcombine.high %v2733_v28, %v2749_v46 }
 0x258   : > { %v3228_v7 = vcombine.low %v5076_v19, %v5080_v31 }
 0x259   : > { %v5095_v11 = vrot.slane %v2836_v60, %v4139_v49  ;;  %v5098_v41 = vrot.slane %v2837_v30, %v4139_v49 }
 0x25a   : > { %v2753_v53 = vpop.permute.xlu1 %2752 }
 0x25b   : > { %v2751_v35 = vpop.permute.xlu0 %2750  ;;  %v2884_v24 = vcombine.low %v5103_v38, %v5095_v11  ;;  %v2900_v18 = vcombine.low %v5106_v1, %v5098_v41  ;;  %v3108_v59 = vcombine.low %v2737_v63, %v2753_v53  ;;  %v3109_v16 = vcombine.high %v2737_v63, %v2753_v53 }
 0x25c   : > { %v2972_v47 = vcombine.low %v2735_v3, %v2751_v35  ;;  %v2973_v32 = vcombine.high %v2735_v3, %v2751_v35  ;;  %v2885_v44 = vcombine.high %v5103_v38, %v5095_v11 }
 0x25d   : > { %v5133_v3 = vrot.slane %v2884_v24, %v4153_v6  ;;  %v5136_v58 = vrot.slane %v2900_v18, %v4153_v6  ;;  %v5141_v53 = vrot.slane %v3108_v59, %v4139_v49  ;;  %v5144_v35 = vrot.slane %v3109_v16, %v4139_v49 }
 0x25e   : > { %v2757_v43 = vpop.permute.xlu1 %2756  ;;  %v5127_v54 = vrot.slane %v2972_v47, %v4139_v49  ;;  %v5130_v28 = vrot.slane %v2973_v32, %v4139_v49 }
 0x25f   : > { %v5082_v2 = vpop.permute.xlu0 %2754 }
 0x260   : > { %v3036_v52 = vcombine.low %v5122_v15, %v5130_v28  ;;  %v3244_v27 = vcombine.low %v5078_v57, %v5082_v2  ;;  %v3245_v21 = vcombine.high %v5078_v57, %v5082_v2  ;;  %v3037_v11 = vcombine.high %v5122_v15, %v5130_v28 }
 0x262   : > { %v5084_v61 = vpop.permute.xlu1 %2760  ;;  %v5242_v0 = vrot.slane %v3244_v27, %v4139_v49  ;;  %v5245_v62 = vrot.slane %v3245_v21, %v4139_v49 }
 0x263   : > { %v5086_v34 = vpop.permute.xlu0 %2758 }
 0x266   : > { %v2765_v23 = vpop.permute.xlu1 %2764 }
 0x267   : > { %v5088_v45 = vpop.permute.xlu0 %2762 }
 0x26a   : > { %v5090_v10 = vpop.permute.xlu1 %2768 }
 0x26b   : > { %v5092_v33 = vpop.permute.xlu0 %2766 }
 0x26e   : > { %v2773_v42 = vpop.permute.xlu1 %2772 }
 0x26f   : > { %v5100_v17 = vpop.permute.xlu0 %2770  ;;  %v2852_v39 = vcombine.low %v2757_v43, %v2773_v42  ;;  %v2853_v13 = vcombine.high %v2757_v43, %v2773_v42  ;;  %v3020_v42 = vcombine.low %v5119_v56, %v5127_v54 }
 0x271   : > { %v5147_v43 = vrot.slane %v2852_v39, %v4139_v49  ;;  %v5150_v60 = vrot.slane %v2853_v13, %v4139_v49 }
 0x272   : > { %v2777_v29 = vpop.permute.xlu1 %2776 }
 0x273   : > { %v2775_v20 = vpop.permute.xlu0 %2774  ;;  %v3124_v30 = vcombine.low %v5084_v61, %v2777_v29  ;;  %v3125_v50 = vcombine.high %v5084_v61, %v2777_v29 }
 0x274   : > { %v2988_v61 = vcombine.low %v5086_v34, %v2775_v20  ;;  %v2989_v47 = vcombine.high %v5086_v34, %v2775_v20 }
 0x275   : > { %v5179_v2 = vrot.slane %v3124_v30, %v4139_v49  ;;  %v5182_v34 = vrot.slane %v3125_v50, %v4139_v49 }
 0x276   : > { %v2781_v63 = vpop.permute.xlu1 %2780 }
 0x277   : > { %v2868_v25 = vcombine.low %v2765_v23, %v2781_v63  ;;  %v2869_v36 = vcombine.high %v2765_v23, %v2781_v63  ;;  %v5138_v46 = vpop.permute.xlu0 %2778 }
 0x279   : > { %v5155_v23 = vrot.slane %v2868_v25, %v4139_v49  ;;  %v5158_v51 = vrot.slane %v2869_v36, %v4139_v49  ;;  %v5203_v25 = vrot.slane %v2988_v61, %v4139_v49  ;;  %v5206_v36 = vrot.slane %v2989_v47, %v4139_v49 }
 0x27a   : > { %v2785_v14 = vpop.permute.xlu1 %2784  ;;  %v3172_v61 = vcombine.low %v5116_v22, %v5144_v35 }
 0x27b   : > { %v2916_v32 = vcombine.low %v5147_v43, %v5155_v23  ;;  %v2932_v29 = vcombine.low %v5150_v60, %v5158_v51  ;;  %v2783_v24 = vpop.permute.xlu0 %2782  ;;  %v3140_v18 = vcombine.low %v5090_v10, %v2785_v14  ;;  %v3141_v59 = vcombine.high %v5090_v10, %v2785_v14 }
 0x27c   : > { %v3004_v16 = vcombine.low %v5092_v33, %v2783_v24  ;;  %v3005_v57 = vcombine.high %v5092_v33, %v2783_v24  ;;  %v3229_v14 = vcombine.high %v5076_v19, %v5080_v31 }
 0x27d   : > { %v5185_v20 = vrot.slane %v2916_v32, %v4153_v6  ;;  %v5188_v39 = vrot.slane %v2932_v29, %v4153_v6  ;;  %v5191_v13 = vrot.slane %v3140_v18, %v4139_v49  ;;  %v5194_v10 = vrot.slane %v3141_v59, %v4139_v49 }
 0x27e   : > { %v5197_v33 = vrot.slane %v3004_v16, %v4139_v49  ;;  %v5200_v63 = vrot.slane %v3005_v57, %v4139_v49  ;;  %v5215_v32 = vrot.slane %v3228_v7, %v4139_v49  ;;  %v3156_v29 = vcombine.low %v5113_v4, %v5141_v53 }
 0x27f   : > { %v2949_v30 = vcombine.high %v5133_v3, %v5185_v20  ;;  %v2953_v50 = vcombine.high %v5136_v58, %v5188_v39  ;;  %v3188_v47 = vcombine.low %v5179_v2, %v5191_v13  ;;  %v3204_v24 = vcombine.low %v5182_v34, %v5194_v10  ;;  %v2787_v31 = vpop.permute.xlu0 %2786 }
 0x280   : > { %v3052_v18 = vcombine.low %v5203_v25, %v5197_v33  ;;  %v3068_v19 = vcombine.low %v5206_v36, %v5200_v63  ;;  %v5231_v7 = vrot.slane %v3020_v42, %v4153_v6  ;;  %v5234_v59 = vrot.slane %v3036_v52, %v4153_v6 }
 0x281   : > { %3365 = vrot.lane.b32.xlu1 %v2949_v30, %s3866_s4  ;;  %v3260_v16 = vcombine.low %v5088_v45, %v5138_v46  ;;  %v3261_v57 = vcombine.high %v5088_v45, %v5138_v46  ;;  %3377 = vrot.lane.b32.xlu0 %v2953_v50, %s3866_s4  ;;  %v5254_v30 = vrot.slane %v3229_v14, %v4139_v49 }
 0x282   : > { %v5248_v42 = vrot.slane %v3052_v18, %v4153_v6  ;;  %v5251_v52 = vrot.slane %v3068_v19, %v4153_v6  ;;  %v5257_v40 = vrot.slane %v3156_v29, %v4153_v6  ;;  %v3276_v45 = vcombine.low %v5100_v17, %v2787_v31 }
 0x283   : > { %v3277_v46 = vcombine.high %v5100_v17, %v2787_v31  ;;  %v5262_v27 = vrot.slane %v3188_v47, %v4153_v6  ;;  %v5265_v21 = vrot.slane %v3204_v24, %v4153_v6  ;;  %v5272_v18 = vrot.slane %v3260_v16, %v4139_v49 }
 0x284   : > { %v3089_v50 = vcombine.high %v5234_v59, %v5251_v52  ;;  %v3085_v14 = vcombine.high %v5231_v7, %v5248_v42  ;;  %v5275_v29 = vrot.slane %v3261_v57, %v4139_v49  ;;  %v5278_v17 = vrot.slane %v3276_v45, %v4139_v49 }
 0x285   : > { %v5281_v47 = vrot.slane %v3277_v46, %v4139_v49  ;;  %v5284_v24 = vrot.slane %v3172_v61, %v4153_v6  ;;  %v3292_v19 = vcombine.low %v5215_v32, %v5242_v0  ;;  %v3308_v31 = vcombine.low %v5254_v30, %v5245_v62 }
 0x286   : > { %3401 = vrot.lane.b32.xlu0 %v3089_v50, %s3866_s4  ;;  %3389 = vrot.lane.b32.xlu1 %v3085_v14, %s3866_s4  ;;  %v3324_v16 = vcombine.low %v5272_v18, %v5278_v17  ;;  %v3221_v57 = vcombine.high %v5257_v40, %v5262_v27 }
 0x287   : > { %v3340_v49 = vcombine.low %v5275_v29, %v5281_v47  ;;  %v3225_v61 = vcombine.high %v5284_v24, %v5265_v21  ;;  %v5307_v50 = vrot.slane %v3292_v19, %v4153_v6  ;;  %v5310_v14 = vrot.slane %v3308_v31, %v4153_v6 }
 0x288   : > { %v5301_v45 = vrot.slane %v3324_v16, %v4153_v6  ;;  %v2917_v16 = vcombine.high %v5147_v43, %v5155_v23  ;;  %v2901_v23 = vcombine.high %v5106_v1, %v5098_v41  ;;  %v3069_v41 = vcombine.high %v5206_v36, %v5200_v63 }
 0x289   : > { %v5304_v46 = vrot.slane %v3340_v49, %v4153_v6  ;;  %v2933_v49 = vcombine.high %v5150_v60, %v5158_v51  ;;  %v3053_v60 = vcombine.high %v5203_v25, %v5197_v33  ;;  %v2899_v1 = vrot.slane %v2885_v44, %v4153_v6 }
 0x28a   : > { %3425 = vrot.lane.b32.xlu0 %v3225_v61, %s3866_s4  ;;  %3413 = vrot.lane.b32.xlu1 %v3221_v57, %s3866_s4  ;;  %v3357_v31 = vcombine.high %v5307_v50, %v5301_v45  ;;  %v2948_v61 = vcombine.low %v5133_v3, %v5185_v20  ;;  %v2952_v57 = vcombine.low %v5136_v58, %v5188_v39 }
 0x28b   : > { %v3361_v19 = vcombine.high %v5310_v14, %v5304_v46  ;;  %v3356_v51 = vcombine.low %v5307_v50, %v5301_v45  ;;  %v2931_v38 = vrot.slane %v2917_v16, %v4153_v6  ;;  %v2947_v43 = vrot.slane %v2933_v49, %v4153_v6 }
 0x28c   : > { %v5570_v16 = vcombine.low %v4799_v12, %v4832_v5  ;;  %v5571_v33 = vcombine.low %v4805_v26, %v4839_v48  ;;  %v3189_v44 = vcombine.high %v5179_v2, %v5191_v13  ;;  %v3205_v63 = vcombine.high %v5182_v34, %v5194_v10 }
 0x28d   : > { %v3083_v15 = vrot.slane %v3069_v41, %v4153_v6  ;;  %v2950_v28 = vcombine.low %v2899_v1, %v2931_v38  ;;  %v3157_v25 = vcombine.high %v5113_v4, %v5141_v53  ;;  %v3173_v36 = vcombine.high %v5116_v22, %v5144_v35 }
 0x28e   : > { %3449 = vrot.lane.b32.xlu0 %v3361_v19, %s3866_s4  ;;  %3437 = vrot.lane.b32.xlu1 %v3357_v31, %s3866_s4  ;;  %v2915_v19 = vrot.slane %v2901_v23, %v4153_v6  ;;  %v3021_v31 = vcombine.high %v5119_v56, %v5127_v54  ;;  %v3067_v56 = vrot.slane %v3053_v60, %v4153_v6 }
 0x28f   : > { %v3051_v23 = vrot.slane %v3037_v11, %v4153_v6  ;;  %v3203_v2 = vrot.slane %v3189_v44, %v4153_v6  ;;  %v3219_v34 = vrot.slane %v3205_v63, %v4153_v6  ;;  %v3325_v13 = vcombine.high %v5272_v18, %v5278_v17 }
 0x290   : > { %v2954_v54 = vcombine.low %v2915_v19, %v2947_v43  ;;  %v3035_v49 = vrot.slane %v3021_v31, %v4153_v6  ;;  %v3341_v4 = vcombine.high %v5275_v29, %v5281_v47  ;;  %v3171_v35 = vrot.slane %v3157_v25, %v4153_v6 }
 0x291   : > { %v3090_v53 = vcombine.low %v3051_v23, %v3083_v15  ;;  %v3187_v10 = vrot.slane %v3173_v36, %v4153_v6  ;;  %v3293_v11 = vcombine.high %v5215_v32, %v5242_v0  ;;  %v3309_v60 = vcombine.high %v5254_v30, %v5245_v62 }
 0x292   : > { %2333 = vrot.lane.b32.xlu0 %v5570_v16, %s3865_s3  ;;  %2321 = vrot.lane.b32.xlu1 %v5571_v33, %s3865_s3  ;;  %v3086_v22 = vcombine.low %v3035_v49, %v3067_v56  ;;  %v3339_v18 = vrot.slane %v3325_v13, %v4153_v6  ;;  %v3355_v29 = vrot.slane %v3341_v4, %v4153_v6 }
 0x293   : > { %v3226_v17 = vcombine.low %v3187_v10, %v3219_v34  ;;  %v3222_v47 = vcombine.low %v3171_v35, %v3203_v2  ;;  %v3307_v41 = vrot.slane %v3293_v11, %v4153_v6  ;;  %v3323_v31 = vrot.slane %v3309_v60, %v4153_v6 }
 0x294   : > { %v5572_v32 = vcombine.high %v4805_v26, %v4839_v48  ;;  %v5573_v30 = vcombine.high %v4703_v55, %v4842_v9  ;;  %v2951_v6 = vcombine.high %v2899_v1, %v2931_v38  ;;  %v5574_v16 = vcombine.high %v4799_v12, %v4832_v5  ;;  %v2306_v5 = vpop.permute.xlu1 %2305  ;;  %v2310_v38 = vpop.permute.xlu0 %2309 }
 0x295   : > { %v3362_v0 = vcombine.low %v3323_v31, %v3355_v29  ;;  %v3358_v62 = vcombine.low %v3307_v41, %v3339_v18  ;;  %v3087_v33 = vcombine.high %v3035_v49, %v3067_v56  ;;  %v2955_v44 = vcombine.high %v2915_v19, %v2947_v43 }
 0x296   : > { %3381 = vrot.lane.b32.xlu0 %v2954_v54, %s3865_s3  ;;  %3369 = vrot.lane.b32.xlu1 %v2950_v28, %s3865_s3  ;;  %v3223_v26 = vcombine.high %v3171_v35, %v3203_v2  ;;  %v3091_v48 = vcombine.high %v3051_v23, %v3083_v15  ;;  %v3359_v55 = vcombine.high %v3307_v41, %v3339_v18  ;;  %v5576_v18 = vld [vmem:[#allocation8_spill] sm:$0xff] }
 0x297   : > { %v3227_v9 = vcombine.high %v3187_v10, %v3219_v34  ;;  %v3363_v12 = vcombine.high %v3323_v31, %v3355_v29  ;;  %v5575_v11 = vcombine.low %v4696_v37, %v4835_v8  ;;  %v5577_v29 = vld [vmem:[#allocation10_spill] sm:$0xff]  ;;  %v5579_v37 = vld [vmem:[#allocation9_spill] sm:$0xff]  ;;  %v5580_v8 = vld [vmem:[#allocation11_spill] sm:$0xff]  ;;  %v5582_v20 = vcombine.low %v5231_v7, %v5248_v42 }
 0x298   : > { %v2318_v43 = vpop.permute.xlu1 %2317  ;;  %v2330_v1 = vpop.permute.xlu0 %2329  ;;  %v5583_v58 = vcombine.low %v5234_v59, %v5251_v52  ;;  %v5584_v7 = vcombine.low %v5257_v40, %v5262_v27  ;;  %v5585_v40 = vcombine.low %v5284_v24, %v5265_v21  ;;  %v5586_v24 = vcombine.low %v5310_v14, %v5304_v46 }
 0x299   : > { %v2355_v60 = vsel %vm1216_vm2, %v5575_v11, %v2306_v5 }
 0x29a   : > { %3405 = vrot.lane.b32.xlu0 %v3090_v53, %s3865_s3  ;;  %3393 = vrot.lane.b32.xlu1 %v3086_v22, %s3865_s3  ;;  %v2356_v41 = vsel %vm1218_vm3, %v2355_v60, %v2310_v38 }
 0x29e   : > { %3429 = vrot.lane.b32.xlu0 %v3226_v17, %s3865_s3  ;;  %3417 = vrot.lane.b32.xlu1 %v3222_v47, %s3865_s3  ;;  %v5578_v17 = vcombine.low %v5576_v18, %v5577_v29 }
 0x2a0   : > { %v2358_v47 = vsel %vm1216_vm2, %v5578_v17, %v2318_v43 }
 0x2a2   : > { %3453 = vrot.lane.b32.xlu0 %v3362_v0, %s3865_s3  ;;  %3441 = vrot.lane.b32.xlu1 %v3358_v62, %s3865_s3 }
 0x2a6   : > { %2325 = vrot.lane.b32.xlu0 %v5572_v32, %s3867_s5  ;;  %2313 = vrot.lane.b32.xlu1 %v5573_v30, %s3867_s5 }
 0x2aa   : > { %3373 = vrot.lane.b32.xlu0 %v2951_v6, %s3867_s5  ;;  %2337 = vrot.lane.b32.xlu1 %v5574_v16, %s3867_s5  ;;  %v5581_v6 = vcombine.low %v5579_v37, %v5580_v8 }
 0x2ac   : > { %v2361_v16 = vsel %vm1216_vm2, %v5581_v6, %v2330_v1 }
 0x2ae   : > { %3397 = vrot.lane.b32.xlu0 %v3087_v33, %s3867_s5  ;;  %3385 = vrot.lane.b32.xlu1 %v2955_v44, %s3867_s5 }
 0x2b2   : > { %3421 = vrot.lane.b32.xlu0 %v3223_v26, %s3867_s5  ;;  %3409 = vrot.lane.b32.xlu1 %v3091_v48, %s3867_s5 }
 0x2b6   : > { %3445 = vrot.lane.b32.xlu0 %v3359_v55, %s3867_s5  ;;  %3433 = vrot.lane.b32.xlu1 %v3227_v9, %s3867_s5 }
 0x2ba   : > { %3457 = vrot.lane.b32.xlu1 %v3363_v12, %s3867_s5 }
 0x2f3   : > { %v3366_v19 = vpop.permute.xlu1 %3365  ;;  %v3378_v63 = vpop.permute.xlu0 %3377 }
 0x2f4   : > { %v3460_v33 = vsel %vm1216_vm2, %v2948_v61, %v3366_v19  ;;  %v3463_v3 = vsel %vm1216_vm2, %v2952_v57, %v3378_v63 }
 0x2f8   : > { %v3390_v56 = vpop.permute.xlu1 %3389  ;;  %v3402_v15 = vpop.permute.xlu0 %3401 }
 0x2f9   : > { %v3466_v61 = vsel %vm1216_vm2, %v5582_v20, %v3390_v56  ;;  %v3469_v39 = vsel %vm1216_vm2, %v5583_v58, %v3402_v15 }
 0x2fc   : > { %v3414_v54 = vpop.permute.xlu1 %3413  ;;  %v3426_v28 = vpop.permute.xlu0 %3425 }
 0x2fd   : > { %v3472_v42 = vsel %vm1216_vm2, %v5584_v7, %v3414_v54  ;;  %v3475_v52 = vsel %vm1216_vm2, %v5585_v40, %v3426_v28 }
 0x300   : > { %v3438_v25 = vpop.permute.xlu1 %3437  ;;  %v5420_v36 = vpop.permute.xlu0 %3449 }
 0x301   : > { %v3478_v27 = vsel %vm1216_vm2, %v3356_v51, %v3438_v25  ;;  %v3481_v45 = vsel %vm1216_vm2, %v5586_v24, %v5420_v36 }
 0x304   : > { %v2322_v49 = vpop.permute.xlu1 %2321  ;;  %v2334_v23 = vpop.permute.xlu0 %2333 }
 0x305   : > { %v2359_v31 = vsel %vm1218_vm3, %v2358_v47, %v2322_v49  ;;  %v2362_v44 = vsel %vm1218_vm3, %v2361_v16, %v2334_v23 }
 0x308   : > { %v3370_v2 = vpop.permute.xlu1 %3369  ;;  %v3382_v34 = vpop.permute.xlu0 %3381 }
 0x309   : > { %v3461_v26 = vsel %vm1218_vm3, %v3460_v33, %v3370_v2  ;;  %v3464_v5 = vsel %vm1218_vm3, %v3463_v3, %v3382_v34 }
 0x30c   : > { %v3394_v13 = vpop.permute.xlu1 %3393  ;;  %v3406_v4 = vpop.permute.xlu0 %3405 }
 0x30d   : > { %v3467_v38 = vsel %vm1218_vm3, %v3466_v61, %v3394_v13  ;;  %v3470_v57 = vsel %vm1218_vm3, %v3469_v39, %v3406_v4 }
 0x310   : > { %v3418_v53 = vpop.permute.xlu1 %3417  ;;  %v3430_v22 = vpop.permute.xlu0 %3429 }
 0x311   : > { %v3473_v63 = vsel %vm1218_vm3, %v3472_v42, %v3418_v53  ;;  %v3476_v15 = vsel %vm1218_vm3, %v3475_v52, %v3430_v22 }
 0x314   : > { %v3442_v35 = vpop.permute.xlu1 %3441  ;;  %v3454_v10 = vpop.permute.xlu0 %3453 }
 0x315   : > { %v3479_v54 = vsel %vm1218_vm3, %v3478_v27, %v3442_v35  ;;  %v3482_v50 = vsel %vm1218_vm3, %v3481_v45, %v3454_v10 }
 0x318   : > { %v2314_v0 = vpop.permute.xlu1 %2313  ;;  %v2326_v62 = vpop.permute.xlu0 %2325 }
 0x319   : > { %v2357_v32 = vsel %vm1220_vm4, %v2356_v41, %v2314_v0  ;;  %v2360_v30 = vsel %vm1220_vm4, %v2359_v31, %v2326_v62 }
 0x31a   : > { %2369 = vst [vmem:[%s4564_s8 + $0x68] sm:$0xff] %v2357_v32  ;;  %2370 = vst [vmem:[%s4564_s8 + $0x70] sm:$0xff] %v2360_v30 }
 0x31c   : > { %v2338_v48 = vpop.permute.xlu1 %2337  ;;  %v3374_v55 = vpop.permute.xlu0 %3373 }
 0x31d   : > { %v2363_v9 = vsel %vm1220_vm4, %v2362_v44, %v2338_v48  ;;  %v3462_v12 = vsel %vm1220_vm4, %v3461_v26, %v3374_v55 }
 0x31e   : > { %2371 = vst [vmem:[%s4564_s8 + $0x78] sm:$0xff] %v2363_v9  ;;  %3484 = vst [vmem:[%s4564_s8 + $0x80] sm:$0xff] %v3462_v12 }
 0x320   : > { %v3386_v43 = vpop.permute.xlu1 %3385  ;;  %v3398_v1 = vpop.permute.xlu0 %3397 }
 0x321   : > { %v3465_v19 = vsel %vm1220_vm4, %v3464_v5, %v3386_v43  ;;  %v3468_v49 = vsel %vm1220_vm4, %v3467_v38, %v3398_v1 }
 0x322   : > { %3485 = vst [vmem:[%s4564_s8 + $0x88] sm:$0xff] %v3465_v19  ;;  %3486 = vst [vmem:[%s4564_s8 + $0x90] sm:$0xff] %v3468_v49 }
 0x324   : > { %v3410_v56 = vpop.permute.xlu1 %3409  ;;  %v3422_v23 = vpop.permute.xlu0 %3421 }
 0x325   : > { %v3471_v2 = vsel %vm1220_vm4, %v3470_v57, %v3410_v56  ;;  %v3474_v59 = vsel %vm1220_vm4, %v3473_v63, %v3422_v23 }
 0x326   : > { %3487 = vst [vmem:[%s4564_s8 + $0x98] sm:$0xff] %v3471_v2  ;;  %3488 = vst [vmem:[%s4564_s8 + $0xa0] sm:$0xff] %v3474_v59 }
 0x328   : > { %v3434_v34 = vpop.permute.xlu1 %3433  ;;  %v3446_v13 = vpop.permute.xlu0 %3445 }
 0x329   : > { %v3477_v4 = vsel %vm1220_vm4, %v3476_v15, %v3434_v34  ;;  %v3480_v21 = vsel %vm1220_vm4, %v3479_v54, %v3446_v13 }
 0x32a   : > { %3489 = vst [vmem:[%s4564_s8 + $0xa8] sm:$0xff] %v3477_v4  ;;  %3490 = vst [vmem:[%s4564_s8 + $0xb0] sm:$0xff] %v3480_v21 }
 0x32c   : > { %v3458_v51 = vpop.permute.xlu1 %3457 }
 0x32d   : > { %v3483_v28 = vsel %vm1220_vm4, %v3482_v50, %v3458_v51 }
 0x32e   : > { %3491 = vst [vmem:[%s4564_s8 + $0xb8] sm:$0xff] %v3483_v28 }
 0x32f   : > { %3808 = shalt.err (!%p3805_p8)
}
 0x330   : > { %s3809_s26 = scalar_lea.hbm %s5503_s13, 3072  ;;  %s3813_s29 = scalar_lea.hbm %s5551_s2, 6144 }
 0x331   : > { %p3810_p9 = scmp.ne.s32.totalorder %s5503_s13, %s3809_s26  ;;  %p3814_p0 = scmp.lt.u32.totalorder %s5503_s13, %s5551_s2 }
 0x332   : > { %p3815_p1 = scmp.lt.u32.totalorder %s3813_s29, %s3809_s26  ;;  %p3817_p3 = scmp.lt.u32.totalorder %s3809_s26, %s5503_s13 }
 0x333   : > { %p3811_p12 = pnand %p3810_p9, %p3925_p10 }
 0x334   : > { %p3816_p2 = por %p3815_p1, %p3814_p0 }
 0x335   : > { %p3812_p13 = pneg %p3811_p12 }
 0x336   : > { %p3818_p4 = por %p3817_p3, %p3816_p2 }
 0x338   : > { %p3819_p5 = pnand %p3818_p4, %p3812_p13 }
 0x33a   : > { %3822 = shalt.err (!%p3819_p5)
}
 0x33b   : > { %3737 = dma.vmem_to_hbm [thread:$0]  (%p3925_p10), %s5505_s10, 3072, %s5503_s13, %s3493_s17  }
 0x33c PF: > { %p3743_p6 = scmp.ge.s32.totalorder %s3859_s16, 2  ;;  %s3519_s4 = sand.u32 1, %s3847_s14  }
 0x33d   : > { %s3520_s5 = scalar_lea.sflag [#allocation5], %s3519_s4 }
 0x33e   : > { %p3740_p7 = pnand %p3743_p6, %p3929_p11 }
 0x340   : > { %3842 = dma.done.wait (!%p3740_p7), %s3520_s5, 3072  }
 0x341   : > { %3844 = vsyncadd (!%p3740_p7), %s3520_s5, 4294964224  ;;  %p18_p8 = scmp.ge.s32.totalorder %s3912_s19, 4   ;;  %s5587_s14 = smov %s3851_s15 }
 0x342   : > { %s5588_s15 = smov %s3855_s0  ;;  %s5589_s0 = smov %s3923_s22 }
 0x343   : > { %s5590_s16 = smov %s3912_s19  ;;  %20 = sbr.rel (!%p18_p8) target bundleno = 18 (0x12), region = 59 }
 0x34a   :  { %3525 = vsyncpa [#allocation5], 1 }
 0x34b   :  { %3527 = vsyncpa [#allocation5 + $0x1], 1 }

</bundles_post_ra>
